<compile_context>
chip_gen: v5e
topology: v5e:2x2
jax: 0.10.0
libtpu: 0.0.40
codegen_flags: <defaults>
</compile_context>

<pallas_src>
import functools
import math

import jax
import jax.numpy as jnp
from jax.experimental import pallas as pl
from jax.experimental.pallas import tpu as pltpu


COMPUTE_DTYPE = jnp.bfloat16   # bf16 activations/weights, fp32 accumulation

_MAX_TILE_M = 1024             # measured roofline knee for tiled GEMM tiles
_VMEM_ROW_BUDGET = 12 << 20    # budget for per-row (M-tile-scaled) buffers


def _round_up(x, m):
    return ((x + m - 1) // m) * m


def _choose_tile_m(m_total, bytes_per_row):
    """Pick an M tile: multiple of 16 (bf16 sublane packing), capped so the
    double-buffered, M-scaled VMEM buffers stay under the scoped-VMEM default
    on every chip generation, and never larger than needed."""
    tile = _VMEM_ROW_BUDGET // max(bytes_per_row, 1)
    tile = max(16, min(_MAX_TILE_M, tile))
    tile = max(16, (tile // 16) * 16)
    tile = min(tile, _round_up(m_total, 16))
    return tile


# ----------------------------- Pallas kernels ------------------------------

def _conv_gemm_kernel(taps_ref, w_ref, b_ref, o_ref, *, relu):
    """Conv-as-GEMM with the tap axis folded into K.

    taps_ref: (tile_M, K)    K = k*k*Cin, rows = (batch*pixels) tile
    w_ref   : (K, Cout)
    b_ref   : (1, Cout)      fp32
    o_ref   : (tile_M, Cout)
    """
    acc = jnp.dot(taps_ref[...], w_ref[...], preferred_element_type=jnp.float32)
    acc = acc + b_ref[...]
    if relu:
        acc = jnp.maximum(acc, 0.0)
    o_ref[...] = acc.astype(o_ref.dtype)


def _convlstm_kernel(taps_ref, w_ref, b_ref, c_ref, h_out_ref, c_out_ref):
    """Fused ConvLSTM step: one gate GEMM (Cout = 4*hid) + LSTM gating.

    taps_ref : (tile_M, K)      K = 9 * 2*hid taps of concat([x, h_prev])
    w_ref    : (K, 4*hid)       gate order along Cout: (i, f, o, g)
    b_ref    : (1, 4*hid)       fp32
    c_ref    : (tile_M, hid)    previous cell state (fp32)
    h_out_ref: (tile_M, hid)
    c_out_ref: (tile_M, hid)    fp32, aliased with c_ref's HBM buffer
    """
    hid = c_ref.shape[-1]
    gates = jnp.dot(taps_ref[...], w_ref[...], preferred_element_type=jnp.float32)
    gates = gates + b_ref[...]
    in_gate = jax.nn.sigmoid(gates[:, 0 * hid:1 * hid])
    rem_gate = jax.nn.sigmoid(gates[:, 1 * hid:2 * hid])
    out_gate = jax.nn.sigmoid(gates[:, 2 * hid:3 * hid])
    cell_gate = jnp.tanh(gates[:, 3 * hid:4 * hid])
    c_prev = c_ref[...]
    c_new = rem_gate * c_prev + in_gate * cell_gate
    h_new = out_gate * jnp.tanh(c_new)
    h_out_ref[...] = h_new.astype(h_out_ref.dtype)
    c_out_ref[...] = c_new


# ------------------------------- JAX glue -----------------------------------

def _im2col(x_nhwc, k, stride, pad):
    """Gather conv taps (glue).  (N,H,W,C) -> (N, Ho*Wo, k*k*C).

    Tap ordering along the last axis is (ky, kx, c), matching
    w.reshape(k*k*Cin, Cout) for w of shape (k, k, Cin, Cout).
    """
    # TODO(synk): form the shifted windows inside the kernel from a VMEM-resident
    # padded tile to avoid the k*k im2col HBM blowup at large resolutions.
    N, H, W, C = x_nhwc.shape
    Ho = (H + 2 * pad - k) // stride + 1
    Wo = (W + 2 * pad - k) // stride + 1
    xp = jnp.pad(x_nhwc, ((0, 0), (pad, pad), (pad, pad), (0, 0)))
    cols = []
    for ky in range(k):
        for kx in range(k):
            patch = jax.lax.slice(
                xp,
                (0, ky, kx, 0),
                (N, ky + stride * (Ho - 1) + 1, kx + stride * (Wo - 1) + 1, C),
                (1, stride, stride, 1))
            cols.append(patch.reshape(N, Ho * Wo, C))
    taps = jnp.concatenate(cols, axis=-1)          # (N, Ho*Wo, k*k*C)
    return taps, Ho, Wo


def conv2d(x_nhwc, w, b, *, stride, pad, relu):
    """ConvLayer equivalent (norm=None).  w: (k,k,Cin,Cout), b: (Cout,)."""
    k, _, cin, cout = w.shape
    taps, Ho, Wo = _im2col(x_nhwc.astype(COMPUTE_DTYPE), k, stride, pad)
    N = taps.shape[0]
    K = k * k * cin
    m_total = N * Ho * Wo
    taps = taps.reshape(m_total, K)                # batch merged into M

    # per-row bytes: double-buffered taps (bf16) + double-buffered output (bf16)
    bytes_per_row = 2 * K * 2 + 2 * cout * 2
    tile_m = _choose_tile_m(m_total, bytes_per_row)
    m_pad = _round_up(m_total, tile_m)
    if m_pad != m_total:
        taps = jnp.pad(taps, ((0, m_pad - m_total), (0, 0)))

    w2 = w.reshape(K, cout).astype(COMPUTE_DTYPE)
    b2 = b.reshape(1, cout).astype(jnp.float32)

    out = pl.pallas_call(
        functools.partial(_conv_gemm_kernel, relu=relu),
        out_shape=jax.ShapeDtypeStruct((m_pad, cout), COMPUTE_DTYPE),
        grid=(m_pad // tile_m,),
        in_specs=[
            pl.BlockSpec((tile_m, K), lambda m: (m, 0)),
            pl.BlockSpec((K, cout), lambda m: (0, 0)),
            pl.BlockSpec((1, cout), lambda m: (0, 0)),
        ],
        out_specs=pl.BlockSpec((tile_m, cout), lambda m: (m, 0)),
        compiler_params=pltpu.CompilerParams(dimension_semantics=("parallel",)),
    )(taps, w2, b2)
    return out[:m_total].reshape(N, Ho, Wo, cout)


def convlstm_step(x_nhwc, h_prev, c_prev, w_gates, b_gates):
    """ConvLSTM(input=hid, hidden=hid, k=3).  x/h NHWC (N,H,W,hid); c fp32."""
    N, H, W, hid = x_nhwc.shape
    k = 3
    cin = 2 * hid
    xh = jnp.concatenate(
        [x_nhwc.astype(COMPUTE_DTYPE), h_prev.astype(COMPUTE_DTYPE)], axis=-1)
    taps, Ho, Wo = _im2col(xh, k, 1, k // 2)       # Ho==H, Wo==W
    K = k * k * cin
    m_total = N * H * W
    taps = taps.reshape(m_total, K)
    c_flat = c_prev.astype(jnp.float32).reshape(m_total, hid)

    # per-row bytes: 2x taps (bf16) + 2x c-in (fp32) + 2x h-out (bf16) + 2x c-out (fp32)
    bytes_per_row = 2 * K * 2 + 2 * hid * 4 + 2 * hid * 2 + 2 * hid * 4
    tile_m = _choose_tile_m(m_total, bytes_per_row)
    m_pad = _round_up(m_total, tile_m)
    if m_pad != m_total:
        taps = jnp.pad(taps, ((0, m_pad - m_total), (0, 0)))
        c_flat = jnp.pad(c_flat, ((0, m_pad - m_total), (0, 0)))

    w2 = w_gates.reshape(K, 4 * hid).astype(COMPUTE_DTYPE)
    b2 = b_gates.reshape(1, 4 * hid).astype(jnp.float32)

    h_new, c_new = pl.pallas_call(
        _convlstm_kernel,
        out_shape=(jax.ShapeDtypeStruct((m_pad, hid), COMPUTE_DTYPE),
                   jax.ShapeDtypeStruct((m_pad, hid), jnp.float32)),
        grid=(m_pad // tile_m,),
        in_specs=[
            pl.BlockSpec((tile_m, K), lambda m: (m, 0)),
            pl.BlockSpec((K, 4 * hid), lambda m: (0, 0)),
            pl.BlockSpec((1, 4 * hid), lambda m: (0, 0)),
            pl.BlockSpec((tile_m, hid), lambda m: (m, 0)),
        ],
        out_specs=(pl.BlockSpec((tile_m, hid), lambda m: (m, 0)),
                   pl.BlockSpec((tile_m, hid), lambda m: (m, 0))),
        input_output_aliases={3: 1},               # in-place cell-state update
        compiler_params=pltpu.CompilerParams(dimension_semantics=("parallel",)),
    )(taps, w2, b2, c_flat)

    h_new = h_new[:m_total].reshape(N, H, W, hid)
    c_new = c_new[:m_total].reshape(N, H, W, hid)
    return h_new, c_new


# --------------------------- parameter init ---------------------------------

def _conv_init(key, k, cin, cout):
    kw, kb = jax.random.split(key)
    bound = 1.0 / math.sqrt(cin * k * k)          # PyTorch Conv2d default init
    w = jax.random.uniform(kw, (k, k, cin, cout), jnp.float32, -bound, bound)
    b = jax.random.uniform(kb, (cout,), jnp.float32, -bound, bound)
    return w, b


def init_params(key, num_input_channels, base_num_channels, num_encoders):
    keys = jax.random.split(key, 1 + 2 * num_encoders)
    params = {}
    params["head_w"], params["head_b"] = _conv_init(
        keys[0], 5, num_input_channels + 2, base_num_channels)
    enc_in = [base_num_channels * 2 ** i for i in range(num_encoders)]
    enc_out = [base_num_channels * 2 ** (i + 1) for i in range(num_encoders)]
    encoders = []
    for i, (cin, cout) in enumerate(zip(enc_in, enc_out)):
        cw, cb = _conv_init(keys[1 + 2 * i], 5, cin, cout)
        # Fused gate conv: (3,3, 2*hid, 4*hid); the 4*hid output channels are
        # laid out as contiguous [i | f | o | g] blocks (torch.chunk(4) order).
        gw, gb = _conv_init(keys[2 + 2 * i], 3, 2 * cout, 4 * cout)
        encoders.append({"conv_w": cw, "conv_b": cb, "gates_w": gw, "gates_b": gb})
    params["encoders"] = encoders
    return params


# ------------------------------- forward ------------------------------------

def recurrent_ref_encoder_forward(params, x, masks, prev_states=None):
    """x: (B, C, H, W) NCHW;  masks: (B, no, H, W).  Returns (out, states) in
    NCHW conventions, matching the PyTorch module."""
    B, C, H, W = x.shape
    no = masks.shape[1]

    # others[:, i] = sum_{j != i} masks[:, j]
    total = jnp.sum(masks, axis=1, keepdims=True)
    others = total - masks
    g = jnp.stack([masks, others], axis=2)                    # (B, no, 2, H, W)
    xe = jnp.broadcast_to(x[:, None], (B, no, C, H, W))
    g = jnp.concatenate([xe, g], axis=2)                      # (B, no, C+2, H, W)
    xf = g.reshape(B * no, C + 2, H, W)                       # flatten(0, 1)

    # NCHW -> NHWC for the Pallas kernels
    feat = jnp.transpose(xf, (0, 2, 3, 1))

    # head: ConvLayer(C+2 -> base, k=5, s=2, p=2, ReLU)
    feat = conv2d(feat, params["head_w"], params["head_b"], stride=2, pad=2, relu=True)

    num_encoders = len(params["encoders"])
    if prev_states is None:
        prev_states = [None] * num_encoders

    states = []
    for i, ep in enumerate(params["encoders"]):
        # RecurrentConvLayer: strided conv + ConvLSTM
        feat = conv2d(feat, ep["conv_w"], ep["conv_b"], stride=2, pad=2, relu=True)
        N, He, We, hid = feat.shape
        if prev_states[i] is None:
            h_prev = jnp.zeros((N, He, We, hid), feat.dtype)
            c_prev = jnp.zeros((N, He, We, hid), jnp.float32)
        else:  # prev state given in NCHW (PyTorch convention)
            h_prev = jnp.transpose(prev_states[i][0], (0, 2, 3, 1))
            c_prev = jnp.transpose(prev_states[i][1], (0, 2, 3, 1))
        h, c = convlstm_step(feat, h_prev, c_prev, ep["gates_w"], ep["gates_b"])
        feat = h
        states.append((jnp.transpose(h, (0, 3, 1, 2)).astype(x.dtype),
                       jnp.transpose(c, (0, 3, 1, 2))))

    out = jnp.transpose(feat, (0, 3, 1, 2)).astype(x.dtype)   # NHWC -> NCHW
    out = out.reshape(B, no, out.shape[1], out.shape[2], out.shape[3])
    return out, states


# --------------------------------- main --------------------------------------

if __name__ == "__main__":
    key = jax.random.PRNGKey(0)
    kx, km, kp = jax.random.split(key, 3)

    B, C, H, W = 2, 4, 16, 16      # x: B C H W
    no = 2                         # num_objects (masks: B no H W)
    base_num_channels = 8
    num_encoders = 2

    x = jax.random.normal(kx, (B, C, H, W), jnp.float32)
    masks = (jax.random.uniform(km, (B, no, H, W)) > 0.5).astype(jnp.float32)

    params = init_params(kp, C, base_num_channels, num_encoders)

    fwd = jax.jit(recurrent_ref_encoder_forward)
    out, states = fwd(params, x, masks)
    out = jax.block_until_ready(out)
    for h, c in states:
        jax.block_until_ready(h)
        jax.block_until_ready(c)

    expected = (B, no,
                base_num_channels * 2 ** num_encoders,
                H // 2 ** (num_encoders + 1),
                W // 2 ** (num_encoders + 1))
    assert out.shape == expected, (out.shape, expected)
    assert len(states) == num_encoders

    print("KERNEL_OK")
</pallas_src>

<mosaic_0001>
module attributes {stable_mosaic.version = 11 : i64} {
  func.func @_conv_gemm_kernel(%arg0: i32, %arg1: memref<256x150xbf16, #tpu.memory_space<vmem>>, %arg2: memref<150x8xbf16, #tpu.memory_space<vmem>>, %arg3: memref<1x8xf32, #tpu.memory_space<vmem>>, %arg4: memref<256x8xbf16, #tpu.memory_space<vmem>>) attributes {dimension_semantics = [#tpu.dimension_semantics<parallel>], iteration_bounds = array<i64: 1>, scalar_prefetch = 0 : i64, scratch_operands = 0 : i64, tpu.core_type = #tpu.core_type<tc>, window_params = [{transform_indices = @transform_0, window_bounds = array<i64: 256, 150>}, {pipeline_mode = #tpu.pipeline_mode<synchronous>, transform_indices = @transform_1, window_bounds = array<i64: 150, 8>}, {pipeline_mode = #tpu.pipeline_mode<synchronous>, transform_indices = @transform_2, window_bounds = array<i64: 1, 8>}, {transform_indices = @transform_3, window_bounds = array<i64: 256, 8>}]} {
    %c0 = arith.constant 0 : index
    %c0_0 = arith.constant 0 : index
    %0 = vector.load %arg1[%c0, %c0_0] : memref<256x150xbf16, #tpu.memory_space<vmem>>, vector<256x150xbf16>
    %c0_1 = arith.constant 0 : index
    %c0_2 = arith.constant 0 : index
    %1 = vector.load %arg2[%c0_1, %c0_2] : memref<150x8xbf16, #tpu.memory_space<vmem>>, vector<150x8xbf16>
    %cst = arith.constant dense<0.000000e+00> : vector<256x8xf32>
    %2 = tpu.matmul %0, %1, %cst {dimension_numbers = #tpu.dot_dimension_numbers<[1], [0], [0], [1], [0, 0, 1, 1], [], []>} : vector<256x150xbf16>, vector<150x8xbf16>, vector<256x8xf32> -> vector<256x8xf32>
    %c0_3 = arith.constant 0 : index
    %c0_4 = arith.constant 0 : index
    %3 = vector.load %arg3[%c0_3, %c0_4] : memref<1x8xf32, #tpu.memory_space<vmem>>, vector<1x8xf32>
    %4 = vector.broadcast %3 : vector<1x8xf32> to vector<256x8xf32>
    %5 = arith.addf %2, %4 : vector<256x8xf32>
    %cst_5 = arith.constant 0.000000e+00 : f32
    %6 = vector.broadcast %cst_5 : f32 to vector<256x8xf32>
    %7 = arith.maximumf %5, %6 : vector<256x8xf32>
    %8 = arith.truncf %7 : vector<256x8xf32> to vector<256x8xbf16>
    %c0_6 = arith.constant 0 : index
    %c0_7 = arith.constant 0 : index
    %9 = vector.load %arg4[%c0_6, %c0_7] : memref<256x8xbf16, #tpu.memory_space<vmem>>, vector<256x8xbf16>
    tpu.vector_store %arg4[%c0_6, %c0_7], %8 {strides = array<i32>} : memref<256x8xbf16, #tpu.memory_space<vmem>>, vector<256x8xbf16>,
    return
  }
  func.func @transform_0(%arg0: i32) -> (i32, i32) {
    %c0_i32 = arith.constant 0 : i32
    %c0_i32_0 = arith.constant 0 : i32
    return %arg0, %c0_i32 : i32, i32
  }
  func.func @transform_1(%arg0: i32) -> (i32, i32) {
    %c0_i32 = arith.constant 0 : i32
    %c0_i32_0 = arith.constant 0 : i32
    %c0_i32_1 = arith.constant 0 : i32
    return %c0_i32, %c0_i32_0 : i32, i32
  }
  func.func @transform_2(%arg0: i32) -> (i32, i32) {
    %c0_i32 = arith.constant 0 : i32
    %c0_i32_0 = arith.constant 0 : i32
    %c0_i32_1 = arith.constant 0 : i32
    return %c0_i32, %c0_i32_0 : i32, i32
  }
  func.func @transform_3(%arg0: i32) -> (i32, i32) {
    %c0_i32 = arith.constant 0 : i32
    %c0_i32_0 = arith.constant 0 : i32
    return %arg0, %c0_i32 : i32, i32
  }
}

module attributes {stable_mosaic.version = 11 : i64} {
  func.func @_conv_gemm_kernel(%arg0: i32, %arg1: memref<64x200xbf16, #tpu.memory_space<vmem>>, %arg2: memref<200x16xbf16, #tpu.memory_space<vmem>>, %arg3: memref<1x16xf32, #tpu.memory_space<vmem>>, %arg4: memref<64x16xbf16, #tpu.memory_space<vmem>>) attributes {dimension_semantics = [#tpu.dimension_semantics<parallel>], iteration_bounds = array<i64: 1>, scalar_prefetch = 0 : i64, scratch_operands = 0 : i64, tpu.core_type = #tpu.core_type<tc>, window_params = [{transform_indices = @transform_0, window_bounds = array<i64: 64, 200>}, {pipeline_mode = #tpu.pipeline_mode<synchronous>, transform_indices = @transform_1, window_bounds = array<i64: 200, 16>}, {pipeline_mode = #tpu.pipeline_mode<synchronous>, transform_indices = @transform_2, window_bounds = array<i64: 1, 16>}, {transform_indices = @transform_3, window_bounds = array<i64: 64, 16>}]} {
    %c0 = arith.constant 0 : index
    %c0_0 = arith.constant 0 : index
    %0 = vector.load %arg1[%c0, %c0_0] : memref<64x200xbf16, #tpu.memory_space<vmem>>, vector<64x200xbf16>
    %c0_1 = arith.constant 0 : index
    %c0_2 = arith.constant 0 : index
    %1 = vector.load %arg2[%c0_1, %c0_2] : memref<200x16xbf16, #tpu.memory_space<vmem>>, vector<200x16xbf16>
    %cst = arith.constant dense<0.000000e+00> : vector<64x16xf32>
    %2 = tpu.matmul %0, %1, %cst {dimension_numbers = #tpu.dot_dimension_numbers<[1], [0], [0], [1], [0, 0, 1, 1], [], []>} : vector<64x200xbf16>, vector<200x16xbf16>, vector<64x16xf32> -> vector<64x16xf32>
    %c0_3 = arith.constant 0 : index
    %c0_4 = arith.constant 0 : index
    %3 = vector.load %arg3[%c0_3, %c0_4] : memref<1x16xf32, #tpu.memory_space<vmem>>, vector<1x16xf32>
    %4 = vector.broadcast %3 : vector<1x16xf32> to vector<64x16xf32>
    %5 = arith.addf %2, %4 : vector<64x16xf32>
    %cst_5 = arith.constant 0.000000e+00 : f32
    %6 = vector.broadcast %cst_5 : f32 to vector<64x16xf32>
    %7 = arith.maximumf %5, %6 : vector<64x16xf32>
    %8 = arith.truncf %7 : vector<64x16xf32> to vector<64x16xbf16>
    %c0_6 = arith.constant 0 : index
    %c0_7 = arith.constant 0 : index
    %9 = vector.load %arg4[%c0_6, %c0_7] : memref<64x16xbf16, #tpu.memory_space<vmem>>, vector<64x16xbf16>
    tpu.vector_store %arg4[%c0_6, %c0_7], %8 {strides = array<i32>} : memref<64x16xbf16, #tpu.memory_space<vmem>>, vector<64x16xbf16>,
    return
  }
  func.func @transform_0(%arg0: i32) -> (i32, i32) {
    %c0_i32 = arith.constant 0 : i32
    %c0_i32_0 = arith.constant 0 : i32
    return %arg0, %c0_i32 : i32, i32
  }
  func.func @transform_1(%arg0: i32) -> (i32, i32) {
    %c0_i32 = arith.constant 0 : i32
    %c0_i32_0 = arith.constant 0 : i32
    %c0_i32_1 = arith.constant 0 : i32
    return %c0_i32, %c0_i32_0 : i32, i32
  }
  func.func @transform_2(%arg0: i32) -> (i32, i32) {
    %c0_i32 = arith.constant 0 : i32
    %c0_i32_0 = arith.constant 0 : i32
    %c0_i32_1 = arith.constant 0 : i32
    return %c0_i32, %c0_i32_0 : i32, i32
  }
  func.func @transform_3(%arg0: i32) -> (i32, i32) {
    %c0_i32 = arith.constant 0 : i32
    %c0_i32_0 = arith.constant 0 : i32
    return %arg0, %c0_i32 : i32, i32
  }
}

module attributes {stable_mosaic.version = 11 : i64} {
  func.func @_convlstm_kernel(%arg0: i32, %arg1: memref<64x288xbf16, #tpu.memory_space<vmem>>, %arg2: memref<288x64xbf16, #tpu.memory_space<vmem>>, %arg3: memref<1x64xf32, #tpu.memory_space<vmem>>, %arg4: memref<64x16xf32, #tpu.memory_space<vmem>>, %arg5: memref<64x16xbf16, #tpu.memory_space<vmem>>, %arg6: memref<64x16xf32, #tpu.memory_space<vmem>>) attributes {dimension_semantics = [#tpu.dimension_semantics<parallel>], iteration_bounds = array<i64: 1>, scalar_prefetch = 0 : i64, scratch_operands = 0 : i64, tpu.core_type = #tpu.core_type<tc>, window_params = [{transform_indices = @transform_0, window_bounds = array<i64: 64, 288>}, {pipeline_mode = #tpu.pipeline_mode<synchronous>, transform_indices = @transform_1, window_bounds = array<i64: 288, 64>}, {pipeline_mode = #tpu.pipeline_mode<synchronous>, transform_indices = @transform_2, window_bounds = array<i64: 1, 64>}, {transform_indices = @transform_3, window_bounds = array<i64: 64, 16>}, {transform_indices = @transform_4, window_bounds = array<i64: 64, 16>}, {transform_indices = @transform_5, window_bounds = array<i64: 64, 16>}]} {
    %c0 = arith.constant 0 : index
    %c0_0 = arith.constant 0 : index
    %0 = vector.load %arg1[%c0, %c0_0] : memref<64x288xbf16, #tpu.memory_space<vmem>>, vector<64x288xbf16>
    %c0_1 = arith.constant 0 : index
    %c0_2 = arith.constant 0 : index
    %1 = vector.load %arg2[%c0_1, %c0_2] : memref<288x64xbf16, #tpu.memory_space<vmem>>, vector<288x64xbf16>
    %cst = arith.constant dense<0.000000e+00> : vector<64x64xf32>
    %2 = tpu.matmul %0, %1, %cst {dimension_numbers = #tpu.dot_dimension_numbers<[1], [0], [0], [1], [0, 0, 1, 1], [], []>} : vector<64x288xbf16>, vector<288x64xbf16>, vector<64x64xf32> -> vector<64x64xf32>
    %c0_3 = arith.constant 0 : index
    %c0_4 = arith.constant 0 : index
    %3 = vector.load %arg3[%c0_3, %c0_4] : memref<1x64xf32, #tpu.memory_space<vmem>>, vector<1x64xf32>
    %4 = vector.broadcast %3 : vector<1x64xf32> to vector<64x64xf32>
    %5 = arith.addf %2, %4 : vector<64x64xf32>
    %6 = vector.extract_strided_slice %5 {offsets = [0, 0], sizes = [64, 16], strides = [1, 1]} : vector<64x64xf32> to vector<64x16xf32>
    %7 = arith.negf %6 : vector<64x16xf32>
    %8 = math.exp %7 : vector<64x16xf32>
    %cst_5 = arith.constant 1.000000e+00 : f32
    %9 = vector.broadcast %cst_5 : f32 to vector<64x16xf32>
    %10 = arith.addf %9, %8 : vector<64x16xf32>
    %11 = arith.divf %9, %10 : vector<64x16xf32>
    %12 = vector.extract_strided_slice %5 {offsets = [0, 16], sizes = [64, 16], strides = [1, 1]} : vector<64x64xf32> to vector<64x16xf32>
    %13 = arith.negf %12 : vector<64x16xf32>
    %14 = math.exp %13 : vector<64x16xf32>
    %cst_6 = arith.constant 1.000000e+00 : f32
    %15 = vector.broadcast %cst_6 : f32 to vector<64x16xf32>
    %16 = arith.addf %15, %14 : vector<64x16xf32>
    %17 = arith.divf %15, %16 : vector<64x16xf32>
    %18 = vector.extract_strided_slice %5 {offsets = [0, 32], sizes = [64, 16], strides = [1, 1]} : vector<64x64xf32> to vector<64x16xf32>
    %19 = arith.negf %18 : vector<64x16xf32>
    %20 = math.exp %19 : vector<64x16xf32>
    %cst_7 = arith.constant 1.000000e+00 : f32
    %21 = vector.broadcast %cst_7 : f32 to vector<64x16xf32>
    %22 = arith.addf %21, %20 : vector<64x16xf32>
    %23 = arith.divf %21, %22 : vector<64x16xf32>
    %24 = vector.extract_strided_slice %5 {offsets = [0, 48], sizes = [64, 16], strides = [1, 1]} : vector<64x64xf32> to vector<64x16xf32>
    %25 = math.tanh %24 : vector<64x16xf32>
    %c0_8 = arith.constant 0 : index
    %c0_9 = arith.constant 0 : index
    %26 = vector.load %arg4[%c0_8, %c0_9] : memref<64x16xf32, #tpu.memory_space<vmem>>, vector<64x16xf32>
    %27 = arith.mulf %17, %26 : vector<64x16xf32>
    %28 = arith.mulf %11, %25 : vector<64x16xf32>
    %29 = arith.addf %27, %28 : vector<64x16xf32>
    %30 = math.tanh %29 : vector<64x16xf32>
    %31 = arith.mulf %23, %30 : vector<64x16xf32>
    %32 = arith.truncf %31 : vector<64x16xf32> to vector<64x16xbf16>
    %c0_10 = arith.constant 0 : index
    %c0_11 = arith.constant 0 : index
    %33 = vector.load %arg5[%c0_10, %c0_11] : memref<64x16xbf16, #tpu.memory_space<vmem>>, vector<64x16xbf16>
    tpu.vector_store %arg5[%c0_10, %c0_11], %32 {strides = array<i32>} : memref<64x16xbf16, #tpu.memory_space<vmem>>, vector<64x16xbf16>,
    %c0_12 = arith.constant 0 : index
    %c0_13 = arith.constant 0 : index
    %34 = vector.load %arg6[%c0_12, %c0_13] : memref<64x16xf32, #tpu.memory_space<vmem>>, vector<64x16xf32>
    tpu.vector_store %arg6[%c0_12, %c0_13], %29 {strides = array<i32>} : memref<64x16xf32, #tpu.memory_space<vmem>>, vector<64x16xf32>,
    return
  }
  func.func @transform_0(%arg0: i32) -> (i32, i32) {
    %c0_i32 = arith.constant 0 : i32
    %c0_i32_0 = arith.constant 0 : i32
    return %arg0, %c0_i32 : i32, i32
  }
  func.func @transform_1(%arg0: i32) -> (i32, i32) {
    %c0_i32 = arith.constant 0 : i32
    %c0_i32_0 = arith.constant 0 : i32
    %c0_i32_1 = arith.constant 0 : i32
    return %c0_i32, %c0_i32_0 : i32, i32
  }
  func.func @transform_2(%arg0: i32) -> (i32, i32) {
    %c0_i32 = arith.constant 0 : i32
    %c0_i32_0 = arith.constant 0 : i32
    %c0_i32_1 = arith.constant 0 : i32
    return %c0_i32, %c0_i32_0 : i32, i32
  }
  func.func @transform_3(%arg0: i32) -> (i32, i32) {
    %c0_i32 = arith.constant 0 : i32
    %c0_i32_0 = arith.constant 0 : i32
    return %arg0, %c0_i32 : i32, i32
  }
  func.func @transform_4(%arg0: i32) -> (i32, i32) {
    %c0_i32 = arith.constant 0 : i32
    %c0_i32_0 = arith.constant 0 : i32
    return %arg0, %c0_i32 : i32, i32
  }
  func.func @transform_5(%arg0: i32) -> (i32, i32) {
    %c0_i32 = arith.constant 0 : i32
    %c0_i32_0 = arith.constant 0 : i32
    return %arg0, %c0_i32 : i32, i32
  }
}

module attributes {stable_mosaic.version = 11 : i64} {
  func.func @_conv_gemm_kernel(%arg0: i32, %arg1: memref<16x400xbf16, #tpu.memory_space<vmem>>, %arg2: memref<400x32xbf16, #tpu.memory_space<vmem>>, %arg3: memref<1x32xf32, #tpu.memory_space<vmem>>, %arg4: memref<16x32xbf16, #tpu.memory_space<vmem>>) attributes {dimension_semantics = [#tpu.dimension_semantics<parallel>], iteration_bounds = array<i64: 1>, scalar_prefetch = 0 : i64, scratch_operands = 0 : i64, tpu.core_type = #tpu.core_type<tc>, window_params = [{transform_indices = @transform_0, window_bounds = array<i64: 16, 400>}, {pipeline_mode = #tpu.pipeline_mode<synchronous>, transform_indices = @transform_1, window_bounds = array<i64: 400, 32>}, {pipeline_mode = #tpu.pipeline_mode<synchronous>, transform_indices = @transform_2, window_bounds = array<i64: 1, 32>}, {transform_indices = @transform_3, window_bounds = array<i64: 16, 32>}]} {
    %c0 = arith.constant 0 : index
    %c0_0 = arith.constant 0 : index
    %0 = vector.load %arg1[%c0, %c0_0] : memref<16x400xbf16, #tpu.memory_space<vmem>>, vector<16x400xbf16>
    %c0_1 = arith.constant 0 : index
    %c0_2 = arith.constant 0 : index
    %1 = vector.load %arg2[%c0_1, %c0_2] : memref<400x32xbf16, #tpu.memory_space<vmem>>, vector<400x32xbf16>
    %cst = arith.constant dense<0.000000e+00> : vector<16x32xf32>
    %2 = tpu.matmul %0, %1, %cst {dimension_numbers = #tpu.dot_dimension_numbers<[1], [0], [0], [1], [0, 0, 1, 1], [], []>} : vector<16x400xbf16>, vector<400x32xbf16>, vector<16x32xf32> -> vector<16x32xf32>
    %c0_3 = arith.constant 0 : index
    %c0_4 = arith.constant 0 : index
    %3 = vector.load %arg3[%c0_3, %c0_4] : memref<1x32xf32, #tpu.memory_space<vmem>>, vector<1x32xf32>
    %4 = vector.broadcast %3 : vector<1x32xf32> to vector<16x32xf32>
    %5 = arith.addf %2, %4 : vector<16x32xf32>
    %cst_5 = arith.constant 0.000000e+00 : f32
    %6 = vector.broadcast %cst_5 : f32 to vector<16x32xf32>
    %7 = arith.maximumf %5, %6 : vector<16x32xf32>
    %8 = arith.truncf %7 : vector<16x32xf32> to vector<16x32xbf16>
    %c0_6 = arith.constant 0 : index
    %c0_7 = arith.constant 0 : index
    %9 = vector.load %arg4[%c0_6, %c0_7] : memref<16x32xbf16, #tpu.memory_space<vmem>>, vector<16x32xbf16>
    tpu.vector_store %arg4[%c0_6, %c0_7], %8 {strides = array<i32>} : memref<16x32xbf16, #tpu.memory_space<vmem>>, vector<16x32xbf16>,
    return
  }
  func.func @transform_0(%arg0: i32) -> (i32, i32) {
    %c0_i32 = arith.constant 0 : i32
    %c0_i32_0 = arith.constant 0 : i32
    return %arg0, %c0_i32 : i32, i32
  }
  func.func @transform_1(%arg0: i32) -> (i32, i32) {
    %c0_i32 = arith.constant 0 : i32
    %c0_i32_0 = arith.constant 0 : i32
    %c0_i32_1 = arith.constant 0 : i32
    return %c0_i32, %c0_i32_0 : i32, i32
  }
  func.func @transform_2(%arg0: i32) -> (i32, i32) {
    %c0_i32 = arith.constant 0 : i32
    %c0_i32_0 = arith.constant 0 : i32
    %c0_i32_1 = arith.constant 0 : i32
    return %c0_i32, %c0_i32_0 : i32, i32
  }
  func.func @transform_3(%arg0: i32) -> (i32, i32) {
    %c0_i32 = arith.constant 0 : i32
    %c0_i32_0 = arith.constant 0 : i32
    return %arg0, %c0_i32 : i32, i32
  }
}

module attributes {stable_mosaic.version = 11 : i64} {
  func.func @_convlstm_kernel(%arg0: i32, %arg1: memref<16x576xbf16, #tpu.memory_space<vmem>>, %arg2: memref<576x128xbf16, #tpu.memory_space<vmem>>, %arg3: memref<1x128xf32, #tpu.memory_space<vmem>>, %arg4: memref<16x32xf32, #tpu.memory_space<vmem>>, %arg5: memref<16x32xbf16, #tpu.memory_space<vmem>>, %arg6: memref<16x32xf32, #tpu.memory_space<vmem>>) attributes {dimension_semantics = [#tpu.dimension_semantics<parallel>], iteration_bounds = array<i64: 1>, scalar_prefetch = 0 : i64, scratch_operands = 0 : i64, tpu.core_type = #tpu.core_type<tc>, window_params = [{transform_indices = @transform_0, window_bounds = array<i64: 16, 576>}, {pipeline_mode = #tpu.pipeline_mode<synchronous>, transform_indices = @transform_1, window_bounds = array<i64: 576, 128>}, {pipeline_mode = #tpu.pipeline_mode<synchronous>, transform_indices = @transform_2, window_bounds = array<i64: 1, 128>}, {transform_indices = @transform_3, window_bounds = array<i64: 16, 32>}, {transform_indices = @transform_4, window_bounds = array<i64: 16, 32>}, {transform_indices = @transform_5, window_bounds = array<i64: 16, 32>}]} {
    %c0 = arith.constant 0 : index
    %c0_0 = arith.constant 0 : index
    %0 = vector.load %arg1[%c0, %c0_0] : memref<16x576xbf16, #tpu.memory_space<vmem>>, vector<16x576xbf16>
    %c0_1 = arith.constant 0 : index
    %c0_2 = arith.constant 0 : index
    %1 = vector.load %arg2[%c0_1, %c0_2] : memref<576x128xbf16, #tpu.memory_space<vmem>>, vector<576x128xbf16>
    %cst = arith.constant dense<0.000000e+00> : vector<16x128xf32>
    %2 = tpu.matmul %0, %1, %cst {dimension_numbers = #tpu.dot_dimension_numbers<[1], [0], [0], [1], [0, 0, 1, 1], [], []>} : vector<16x576xbf16>, vector<576x128xbf16>, vector<16x128xf32> -> vector<16x128xf32>
    %c0_3 = arith.constant 0 : index
    %c0_4 = arith.constant 0 : index
    %3 = vector.load %arg3[%c0_3, %c0_4] : memref<1x128xf32, #tpu.memory_space<vmem>>, vector<1x128xf32>
    %4 = vector.broadcast %3 : vector<1x128xf32> to vector<16x128xf32>
    %5 = arith.addf %2, %4 : vector<16x128xf32>
    %6 = vector.extract_strided_slice %5 {offsets = [0, 0], sizes = [16, 32], strides = [1, 1]} : vector<16x128xf32> to vector<16x32xf32>
    %7 = arith.negf %6 : vector<16x32xf32>
    %8 = math.exp %7 : vector<16x32xf32>
    %cst_5 = arith.constant 1.000000e+00 : f32
    %9 = vector.broadcast %cst_5 : f32 to vector<16x32xf32>
    %10 = arith.addf %9, %8 : vector<16x32xf32>
    %11 = arith.divf %9, %10 : vector<16x32xf32>
    %12 = vector.extract_strided_slice %5 {offsets = [0, 32], sizes = [16, 32], strides = [1, 1]} : vector<16x128xf32> to vector<16x32xf32>
    %13 = arith.negf %12 : vector<16x32xf32>
    %14 = math.exp %13 : vector<16x32xf32>
    %cst_6 = arith.constant 1.000000e+00 : f32
    %15 = vector.broadcast %cst_6 : f32 to vector<16x32xf32>
    %16 = arith.addf %15, %14 : vector<16x32xf32>
    %17 = arith.divf %15, %16 : vector<16x32xf32>
    %18 = vector.extract_strided_slice %5 {offsets = [0, 64], sizes = [16, 32], strides = [1, 1]} : vector<16x128xf32> to vector<16x32xf32>
    %19 = arith.negf %18 : vector<16x32xf32>
    %20 = math.exp %19 : vector<16x32xf32>
    %cst_7 = arith.constant 1.000000e+00 : f32
    %21 = vector.broadcast %cst_7 : f32 to vector<16x32xf32>
    %22 = arith.addf %21, %20 : vector<16x32xf32>
    %23 = arith.divf %21, %22 : vector<16x32xf32>
    %24 = vector.extract_strided_slice %5 {offsets = [0, 96], sizes = [16, 32], strides = [1, 1]} : vector<16x128xf32> to vector<16x32xf32>
    %25 = math.tanh %24 : vector<16x32xf32>
    %c0_8 = arith.constant 0 : index
    %c0_9 = arith.constant 0 : index
    %26 = vector.load %arg4[%c0_8, %c0_9] : memref<16x32xf32, #tpu.memory_space<vmem>>, vector<16x32xf32>
    %27 = arith.mulf %17, %26 : vector<16x32xf32>
    %28 = arith.mulf %11, %25 : vector<16x32xf32>
    %29 = arith.addf %27, %28 : vector<16x32xf32>
    %30 = math.tanh %29 : vector<16x32xf32>
    %31 = arith.mulf %23, %30 : vector<16x32xf32>
    %32 = arith.truncf %31 : vector<16x32xf32> to vector<16x32xbf16>
    %c0_10 = arith.constant 0 : index
    %c0_11 = arith.constant 0 : index
    %33 = vector.load %arg5[%c0_10, %c0_11] : memref<16x32xbf16, #tpu.memory_space<vmem>>, vector<16x32xbf16>
    tpu.vector_store %arg5[%c0_10, %c0_11], %32 {strides = array<i32>} : memref<16x32xbf16, #tpu.memory_space<vmem>>, vector<16x32xbf16>,
    %c0_12 = arith.constant 0 : index
    %c0_13 = arith.constant 0 : index
    %34 = vector.load %arg6[%c0_12, %c0_13] : memref<16x32xf32, #tpu.memory_space<vmem>>, vector<16x32xf32>
    tpu.vector_store %arg6[%c0_12, %c0_13], %29 {strides = array<i32>} : memref<16x32xf32, #tpu.memory_space<vmem>>, vector<16x32xf32>,
    return
  }
  func.func @transform_0(%arg0: i32) -> (i32, i32) {
    %c0_i32 = arith.constant 0 : i32
    %c0_i32_0 = arith.constant 0 : i32
    return %arg0, %c0_i32 : i32, i32
  }
  func.func @transform_1(%arg0: i32) -> (i32, i32) {
    %c0_i32 = arith.constant 0 : i32
    %c0_i32_0 = arith.constant 0 : i32
    %c0_i32_1 = arith.constant 0 : i32
    return %c0_i32, %c0_i32_0 : i32, i32
  }
  func.func @transform_2(%arg0: i32) -> (i32, i32) {
    %c0_i32 = arith.constant 0 : i32
    %c0_i32_0 = arith.constant 0 : i32
    %c0_i32_1 = arith.constant 0 : i32
    return %c0_i32, %c0_i32_0 : i32, i32
  }
  func.func @transform_3(%arg0: i32) -> (i32, i32) {
    %c0_i32 = arith.constant 0 : i32
    %c0_i32_0 = arith.constant 0 : i32
    return %arg0, %c0_i32 : i32, i32
  }
  func.func @transform_4(%arg0: i32) -> (i32, i32) {
    %c0_i32 = arith.constant 0 : i32
    %c0_i32_0 = arith.constant 0 : i32
    return %arg0, %c0_i32 : i32, i32
  }
  func.func @transform_5(%arg0: i32) -> (i32, i32) {
    %c0_i32 = arith.constant 0 : i32
    %c0_i32_0 = arith.constant 0 : i32
    return %arg0, %c0_i32 : i32, i32
  }
}

</mosaic_0001>

<bundles_post_ra>
// kernel: recurrent_ref_encoder_forward.5
= control target key start
LH: loop header
LB: loop body
LE: loop exit
PB: predicated region body
PF: predicated region fallthrough
CT: control target
= control target key end

     0   :  { %vm320_vm0 = vcmask 1042432   ;;  %vm271_vm1 = vcmask 179200   ;;  %vm566_vm2 = vcmask 60416   ;;  %s1264_s1 = inlined_call_operand.vmem [shape: bf16[150,8], index: 1, kind: input, shape index: {}]   ;;  %s1265_s0 = inlined_call_operand.vmem [shape: bf16[256,150], index: 0, kind: input, shape index: {}]   ;;  %s1266_s2 = inlined_call_operand.vmem [shape: f32[1,8], index: 2, kind: input, shape index: {}]   ;;  %s1267_s3 = inlined_call_operand.vmem [shape: bf16[256,8], index: 3, kind: output, shape index: {}]  }
   0x1   :  { %v822_v0 = vld [vmem:[%s1264_s1 + $0x38] sm:$0xff]  ;;  %v65_v1 = vld [vmem:[%s1264_s1 + $0x48] sm:$0x7]  ;;  %v821_v3 = vld [vmem:[%s1264_s1 + $0x30] sm:$0xff] }
   0x2   :  { %v251_v2 = vunpack.c.l.b16 %v65_v1  ;;  %324 = vmatpush.bf16.msra.mxu0 %v822_v0  ;;  %824 = vmatpush.bf16.msra.mxu2 %v822_v0  ;;  %v823_v6 = vld [vmem:[%s1264_s1 + $0x40] sm:$0xff]  ;;  %v820_v7 = vld [vmem:[%s1264_s1 + $0x28] sm:$0xff]  ;;  %v801_v10 = vld [vmem:[%s1265_s0 + $0x94] sm:$0xf] }
   0x3   :  { %v783_v8 = vld [vmem:[%s1265_s0 + $0x4] sm:$0xf]  ;;  %v607_v9 = vld [vmem:[%s1265_s0 + $0x8] sm:$0xf0]  ;;  %v679_v11 = vld [vmem:[%s1265_s0 + $0x98] sm:$0xf0] }
   0x4   :  { %v261_v4 = vpack.c.b16 %v251_v2, %v251_v2  ;;  %v610_v12 = vor.u32 %v783_v8, %v607_v9  ;;  %v819_v13 = vld [vmem:[%s1264_s1 + $0x20] sm:$0xff]  ;;  %v682_v14 = vor.u32 %v801_v10, %v679_v11  ;;  %v818_v15 = vld [vmem:[%s1264_s1 + $0x18] sm:$0xff]  ;;  %v817_v16 = vld [vmem:[%s1264_s1 + $0x10] sm:$0xff] }
   0x5   :  { %v816_v17 = vld [vmem:[%s1264_s1 + $0x8] sm:$0xff]  ;;  %v785_v18 = vld [vmem:[%s1265_s0 + $0x14] sm:$0xf]  ;;  %v615_v19 = vld [vmem:[%s1265_s0 + $0x18] sm:$0xf0] }
   0x6   :  { %v322_v5 = vsel %vm320_vm0, %v261_v4, 0  ;;  %325 = vmatpush.bf16.msra.mxu0 %v821_v3  ;;  %825 = vmatpush.bf16.msra.mxu2 %v821_v3  ;;  %v803_v20 = vld [vmem:[%s1265_s0 + $0xa4] sm:$0xf]  ;;  %v687_v21 = vld [vmem:[%s1265_s0 + $0xa8] sm:$0xf0]  ;;  %v618_v22 = vor.u32 %v785_v18, %v615_v19 }
   0x7   :  { %419 = vmatpush.bf16.msra.mxu1 %v322_v5  ;;  %832 = vmatpush.bf16.msra.mxu3 %v322_v5  ;;  %v815_v23 = vld [vmem:[%s1264_s1] sm:$0xff]  ;;  %v784_v25 = vld [vmem:[%s1265_s0 + $0x4] sm:$0xf0]  ;;  %v690_v26 = vor.u32 %v803_v20, %v687_v21  ;;  %v623_v32 = vld [vmem:[%s1265_s0 + $0x28] sm:$0xf0] }
   0x8   :  { %v605_v24 = vld [vmem:[%s1265_s0] sm:$0xf]  ;;  %v800_v28 = vld [vmem:[%s1265_s0 + $0x84] sm:$0xf0]  ;;  %v787_v31 = vld [vmem:[%s1265_s0 + $0x24] sm:$0xf] }
   0x9   :  { %v669_v27 = vld [vmem:[%s1265_s0 + $0x80] sm:$0xf]  ;;  %v606_v29 = vor.u32 %v784_v25, %v605_v24  ;;  %v805_v33 = vld [vmem:[%s1265_s0 + $0xb4] sm:$0xf]  ;;  %v695_v34 = vld [vmem:[%s1265_s0 + $0xb8] sm:$0xf0]  ;;  %v626_v35 = vor.u32 %v787_v31, %v623_v32 }
   0xa   :  { %326 = vmatpush.bf16.msra.mxu0 %v820_v7  ;;  %826 = vmatpush.bf16.msra.mxu2 %v820_v7  ;;  %v670_v30 = vor.u32 %v800_v28, %v669_v27  ;;  %v613_v36 = vld [vmem:[%s1265_s0 + $0x10] sm:$0xf]  ;;  %v786_v37 = vld [vmem:[%s1265_s0 + $0x14] sm:$0xf0]  ;;  %v698_v38 = vor.u32 %v805_v33, %v695_v34  ;;  %v789_v43 = vld [vmem:[%s1265_s0 + $0x34] sm:$0xf] }
   0xb   :  { %420 = vmatpush.bf16.msra.mxu1 %v823_v6  ;;  %833 = vmatpush.bf16.msra.mxu3 %v823_v6  ;;  %v677_v39 = vld [vmem:[%s1265_s0 + $0x90] sm:$0xf]  ;;  %v802_v40 = vld [vmem:[%s1265_s0 + $0x94] sm:$0xf0]  ;;  %v614_v41 = vor.u32 %v786_v37, %v613_v36  ;;  %v631_v44 = vld [vmem:[%s1265_s0 + $0x38] sm:$0xf0] }
   0xc   :  { %v678_v42 = vor.u32 %v802_v40, %v677_v39  ;;  %v807_v45 = vld [vmem:[%s1265_s0 + $0xc4] sm:$0xf]  ;;  %v703_v46 = vld [vmem:[%s1265_s0 + $0xc8] sm:$0xf0]  ;;  %v634_v47 = vor.u32 %v789_v43, %v631_v44  ;;  %v621_v48 = vld [vmem:[%s1265_s0 + $0x20] sm:$0xf] }
   0xd   :  { %v788_v49 = vld [vmem:[%s1265_s0 + $0x24] sm:$0xf0]  ;;  %v706_v50 = vor.u32 %v807_v45, %v703_v46  ;;  %v685_v51 = vld [vmem:[%s1265_s0 + $0xa0] sm:$0xf]  ;;  %v791_v55 = vld [vmem:[%s1265_s0 + $0x44] sm:$0xf] }
   0xe   :  { %767 = vmatmul.msk.bf16.vlgmr.msra.gmra.mxu1 %vm271_vm1, %v610_v12  ;;  %327 = vmatpush.bf16.msra.mxu0 %v819_v13  ;;  %v804_v52 = vld [vmem:[%s1265_s0 + $0xa4] sm:$0xf0]  ;;  %v622_v53 = vor.u32 %v788_v49, %v621_v48  ;;  %v639_v56 = vld [vmem:[%s1265_s0 + $0x48] sm:$0xf0]  ;;  %v809_v57 = vld [vmem:[%s1265_s0 + $0xd4] sm:$0xf] }
   0xf   :  { %776 = vmatmul.msk.bf16.vlgmr.msra.gmra.mxu3 %vm271_vm1, %v682_v14  ;;  %827 = vmatpush.bf16.msra.mxu2 %v819_v13  ;;  %v686_v54 = vor.u32 %v804_v52, %v685_v51  ;;  %v711_v58 = vld [vmem:[%s1265_s0 + $0xd8] sm:$0xf0]  ;;  %v642_v59 = vor.u32 %v791_v55, %v639_v56  ;;  %v629_v60 = vld [vmem:[%s1265_s0 + $0x30] sm:$0xf]  ;;  %v790_v61 = vld [vmem:[%s1265_s0 + $0x34] sm:$0xf0] }
  0x10   :  { %v714_v62 = vor.u32 %v809_v57, %v711_v58  ;;  %v693_v63 = vld [vmem:[%s1265_s0 + $0xb0] sm:$0xf]  ;;  %v806_v0 = vld [vmem:[%s1265_s0 + $0xb4] sm:$0xf0]  ;;  %v630_v1 = vor.u32 %v790_v61, %v629_v60  ;;  %v793_v3 = vld [vmem:[%s1265_s0 + $0x54] sm:$0xf] }
  0x11   :  { %v694_v2 = vor.u32 %v806_v0, %v693_v63  ;;  %v647_v4 = vld [vmem:[%s1265_s0 + $0x58] sm:$0xf0]  ;;  %v811_v5 = vld [vmem:[%s1265_s0 + $0xe4] sm:$0xf]  ;;  %v719_v6 = vld [vmem:[%s1265_s0 + $0xe8] sm:$0xf0] }
  0x12   :  { %328 = vmatpush.bf16.msra.mxu0 %v818_v15  ;;  %v650_v7 = vor.u32 %v793_v3, %v647_v4  ;;  %v637_v8 = vld [vmem:[%s1265_s0 + $0x40] sm:$0xf]  ;;  %v792_v9 = vld [vmem:[%s1265_s0 + $0x44] sm:$0xf0]  ;;  %v722_v10 = vor.u32 %v811_v5, %v719_v6  ;;  %v813_v18 = vld [vmem:[%s1265_s0 + $0xf4] sm:$0xf] }
  0x13   :  { %828 = vmatpush.bf16.msra.mxu2 %v818_v15  ;;  %v701_v11 = vld [vmem:[%s1265_s0 + $0xc0] sm:$0xf]  ;;  %v808_v12 = vld [vmem:[%s1265_s0 + $0xc4] sm:$0xf0]  ;;  %v638_v13 = vor.u32 %v792_v9, %v637_v8  ;;  %v795_v15 = vld [vmem:[%s1265_s0 + $0x64] sm:$0xf] }
  0x14   :  { %v702_v14 = vor.u32 %v808_v12, %v701_v11  ;;  %v727_v19 = vld [vmem:[%s1265_s0 + $0xf8] sm:$0xf0]  ;;  %v645_v20 = vld [vmem:[%s1265_s0 + $0x50] sm:$0xf]  ;;  %v794_v21 = vld [vmem:[%s1265_s0 + $0x54] sm:$0xf0] }
  0x15   :  { %v810_v24 = vld [vmem:[%s1265_s0 + $0xd4] sm:$0xf0]  ;;  %v646_v25 = vor.u32 %v794_v21, %v645_v20  ;;  %v797_v27 = vld [vmem:[%s1265_s0 + $0x74] sm:$0xf]  ;;  %v663_v28 = vld [vmem:[%s1265_s0 + $0x78] sm:$0xf0] }
  0x16   :  { %329 = vmatpush.bf16.msra.mxu0 %v817_v16  ;;  %v796_v31 = vld [vmem:[%s1265_s0 + $0x64] sm:$0xf0]  ;;  %v717_v32 = vld [vmem:[%s1265_s0 + $0xe0] sm:$0xf]  ;;  %v799_v36 = vld [vmem:[%s1265_s0 + $0x84] sm:$0xf] }
  0x17   :  { %829 = vmatpush.bf16.msra.mxu2 %v817_v16  ;;  %v655_v16 = vld [vmem:[%s1265_s0 + $0x68] sm:$0xf0]  ;;  %v812_v33 = vld [vmem:[%s1265_s0 + $0xe4] sm:$0xf0]  ;;  %v661_v40 = vld [vmem:[%s1265_s0 + $0x70] sm:$0xf] }
  0x18   :  { %v671_v37 = vld [vmem:[%s1265_s0 + $0x88] sm:$0xf0]  ;;  %v814_v43 = vld [vmem:[%s1265_s0 + $0xf4] sm:$0xf0]  ;;  %v1096_v48 = vld [vmem:[%s1266_s2] ss:$0 sm:$0xff] }
  0x1a   :  { %330 = vmatpush.bf16.msra.mxu0 %v816_v17 }
  0x1b   :  { %830 = vmatpush.bf16.msra.mxu2 %v816_v17  ;;  %v658_v17 = vor.u32 %v795_v15, %v655_v16 }
  0x1e   :  { %768 = vmatmul.msk.bf16.gmra.mxu1 %vm271_vm1, %v618_v22  ;;  %331 = vmatpush.bf16.msra.mxu0 %v815_v23  ;;  %v730_v22 = vor.u32 %v813_v18, %v727_v19 }
  0x1f   :  { %777 = vmatmul.msk.bf16.gmra.mxu3 %vm271_vm1, %v690_v26  ;;  %831 = vmatpush.bf16.msra.mxu2 %v815_v23  ;;  %v709_v23 = vld [vmem:[%s1265_s0 + $0xd0] sm:$0xf] }
  0x20   :  { %v710_v26 = vor.u32 %v810_v24, %v709_v23 }
  0x21   :  { %332 = vmatmul.bf16.vlgmr.msra.gmra.mxu0 %v606_v29  ;;  %v666_v29 = vor.u32 %v797_v27, %v663_v28 }
  0x22   :  { %372 = vmatmul.bf16.vlgmr.msra.gmra.mxu2 %v670_v30  ;;  %v653_v30 = vld [vmem:[%s1265_s0 + $0x60] sm:$0xf] }
  0x23   :  { %v654_v34 = vor.u32 %v796_v31, %v653_v30 }
  0x2e   :  { %769 = vmatmul.msk.bf16.gmra.mxu1 %vm271_vm1, %v626_v35  ;;  %v718_v35 = vor.u32 %v812_v33, %v717_v32 }
  0x2f   :  { %778 = vmatmul.msk.bf16.gmra.mxu3 %vm271_vm1, %v698_v38  ;;  %v674_v38 = vor.u32 %v799_v36, %v671_v37 }
  0x31   :  { %337 = vmatmul.bf16.gmra.mxu0 %v614_v41  ;;  %v798_v41 = vld [vmem:[%s1265_s0 + $0x74] sm:$0xf0] }
  0x32   :  { %377 = vmatmul.bf16.gmra.mxu2 %v678_v42  ;;  %v725_v42 = vld [vmem:[%s1265_s0 + $0xf0] sm:$0xf]  ;;  %v662_v44 = vor.u32 %v798_v41, %v661_v40 }
  0x33   :  { %v726_v45 = vor.u32 %v814_v43, %v725_v42 }
  0x3e   :  { %770 = vmatmul.msk.bf16.gmra.mxu1 %vm271_vm1, %v634_v47 }
  0x3f   :  { %779 = vmatmul.msk.bf16.gmra.mxu3 %vm271_vm1, %v706_v50 }
  0x41   :  { %342 = vmatmul.bf16.gmra.mxu0 %v622_v53 }
  0x42   :  { %382 = vmatmul.bf16.gmra.mxu2 %v686_v54 }
  0x4e   :  { %771 = vmatmul.msk.bf16.gmra.mxu1 %vm271_vm1, %v642_v59 }
  0x4f   :  { %780 = vmatmul.msk.bf16.gmra.mxu3 %vm271_vm1, %v714_v62 }
  0x51   :  { %347 = vmatmul.bf16.gmra.mxu0 %v630_v1 }
  0x52   :  { %387 = vmatmul.bf16.gmra.mxu2 %v694_v2 }
  0x5e   :  { %772 = vmatmul.msk.bf16.gmra.mxu1 %vm271_vm1, %v650_v7 }
  0x5f   :  { %781 = vmatmul.msk.bf16.gmra.mxu3 %vm271_vm1, %v722_v10 }
  0x61   :  { %352 = vmatmul.bf16.gmra.mxu0 %v638_v13 }
  0x62   :  { %392 = vmatmul.bf16.gmra.mxu2 %v702_v14 }
  0x6e   :  { %773 = vmatmul.msk.bf16.gmra.mxu1 %vm271_vm1, %v658_v17 }
  0x6f   :  { %782 = vmatmul.msk.bf16.gmra.mxu3 %vm271_vm1, %v730_v22 }
  0x71   :  { %357 = vmatmul.bf16.gmra.mxu0 %v646_v25 }
  0x72   :  { %397 = vmatmul.bf16.gmra.mxu2 %v710_v26 }
  0x7e   :  { %774 = vmatmul.msk.bf16.gmra.mxu1 %vm271_vm1, %v666_v29 }
  0x81   :  { %362 = vmatmul.bf16.gmra.mxu0 %v654_v34 }
  0x82   :  { %402 = vmatmul.bf16.gmra.mxu2 %v718_v35 }
  0x8b   :  { %v422_v39 = vpop.f32.mrf.mxu1 }
  0x8e   :  { %775 = vmatmul.msk.bf16.gmra.mxu1 %vm271_vm1, %v674_v38 }
  0x91   :  { %367 = vmatmul.bf16.gmra.mxu0 %v662_v44 }
  0x92   :  { %407 = vmatmul.bf16.gmra.mxu2 %v726_v45  ;;  %v467_v49 = vpop.f32.mrf.mxu3 }
  0x93   :  { %v424_v46 = vpop.f32.mrf.mxu1 }
  0x9a   :  { %v469_v59 = vpop.f32.mrf.mxu3 }
  0x9b   :  { %v427_v47 = vpop.f32.mrf.mxu1 }
  0x9e   :  { %v333_v50 = vpop.f32.mrf.mxu0 }
  0x9f   :  { %v334_v51 = vadd.f32 %v1096_v48, %v333_v50 }
  0xa1   :  { %v423_v52 = vadd.f32 %v422_v39, %v334_v51 }
  0xa2   :  { %v472_v4 = vpop.f32.mrf.mxu3 }
  0xa3   :  { %v429_v53 = vpop.f32.mrf.mxu1  ;;  %v502_v54 = vmax.f32 %v423_v52, 0.0 }
  0xa5   :  { %v534_v55 = vpack.c.bf16 %v502_v54, %v502_v54  ;;  %v1099_v56 = vpop.f32.mrf.mxu2 }
  0xa6   :  { %v335_v57 = vpop.f32.mrf.mxu0 }
  0xa7   :  { %567 = vst.msk [vmem:[%s1267_s3] sm:$0xf] %vm566_vm2, %v534_v55  ;;  %v336_v58 = vadd.f32 %v1096_v48, %v335_v57 }
  0xa9   :  { %v425_v60 = vadd.f32 %v424_v46, %v336_v58 }
  0xaa   :  { %v474_v17 = vpop.f32.mrf.mxu3 }
  0xab   :  { %v432_v61 = vpop.f32.mrf.mxu1  ;;  %v503_v62 = vmax.f32 %v425_v60, 0.0 }
  0xad   :  { %v535_v63 = vpack.c.bf16 %v503_v62, %v503_v62  ;;  %v1106_v0 = vpop.f32.mrf.mxu2 }
  0xae   :  { %v338_v1 = vpop.f32.mrf.mxu0 }
  0xaf   :  { %568 = vst.msk [vmem:[%s1267_s3 + $0x4] sm:$0xf] %vm566_vm2, %v535_v63  ;;  %v339_v2 = vadd.f32 %v1096_v48, %v338_v1 }
  0xb1   :  { %v428_v3 = vadd.f32 %v427_v47, %v339_v2 }
  0xb2   :  { %v477_v32 = vpop.f32.mrf.mxu3 }
  0xb3   :  { %v434_v5 = vpop.f32.mrf.mxu1  ;;  %v504_v6 = vmax.f32 %v428_v3, 0.0 }
  0xb5   :  { %v536_v7 = vpack.c.bf16 %v504_v6, %v504_v6  ;;  %v378_v8 = vpop.f32.mrf.mxu2 }
  0xb6   :  { %v379_v9 = vadd.f32 %v1096_v48, %v378_v8  ;;  %v340_v10 = vpop.f32.mrf.mxu0 }
  0xb7   :  { %569 = vst.msk [vmem:[%s1267_s3 + $0x8] sm:$0xf] %vm566_vm2, %v536_v7  ;;  %v341_v11 = vadd.f32 %v1096_v48, %v340_v10 }
  0xb8   :  { %v468_v12 = vadd.f32 %v467_v49, %v379_v9 }
  0xb9   :  { %v430_v13 = vadd.f32 %v429_v53, %v341_v11 }
  0xba   :  { %v520_v14 = vmax.f32 %v468_v12, 0.0  ;;  %v479_v47 = vpop.f32.mrf.mxu3 }
  0xbb   :  { %v437_v15 = vpop.f32.mrf.mxu1  ;;  %v505_v16 = vmax.f32 %v430_v13, 0.0 }
  0xbc   :  { %v552_v18 = vpack.c.bf16 %v520_v14, %v520_v14 }
  0xbd   :  { %v537_v19 = vpack.c.bf16 %v505_v16, %v505_v16  ;;  %v380_v20 = vpop.f32.mrf.mxu2 }
  0xbe   :  { %585 = vst.msk [vmem:[%s1267_s3 + $0x48] sm:$0xf] %vm566_vm2, %v552_v18  ;;  %v381_v21 = vadd.f32 %v1096_v48, %v380_v20  ;;  %v343_v22 = vpop.f32.mrf.mxu0 }
  0xbf   :  { %570 = vst.msk [vmem:[%s1267_s3 + $0xc] sm:$0xf] %vm566_vm2, %v537_v19  ;;  %v344_v23 = vadd.f32 %v1096_v48, %v343_v22 }
  0xc0   :  { %v470_v24 = vadd.f32 %v469_v59, %v381_v21 }
  0xc1   :  { %v433_v25 = vadd.f32 %v432_v61, %v344_v23 }
  0xc2   :  { %v521_v26 = vmax.f32 %v470_v24, 0.0  ;;  %v482_v63 = vpop.f32.mrf.mxu3 }
  0xc3   :  { %v439_v27 = vpop.f32.mrf.mxu1  ;;  %v506_v28 = vmax.f32 %v433_v25, 0.0 }
  0xc4   :  { %v553_v29 = vpack.c.bf16 %v521_v26, %v521_v26 }
  0xc5   :  { %v538_v30 = vpack.c.bf16 %v506_v28, %v506_v28  ;;  %v383_v31 = vpop.f32.mrf.mxu2 }
  0xc6   :  { %586 = vst.msk [vmem:[%s1267_s3 + $0x4c] sm:$0xf] %vm566_vm2, %v553_v29  ;;  %v384_v33 = vadd.f32 %v1096_v48, %v383_v31  ;;  %v345_v34 = vpop.f32.mrf.mxu0 }
  0xc7   :  { %571 = vst.msk [vmem:[%s1267_s3 + $0x10] sm:$0xf] %vm566_vm2, %v538_v30  ;;  %v346_v35 = vadd.f32 %v1096_v48, %v345_v34 }
  0xc8   :  { %v473_v36 = vadd.f32 %v472_v4, %v384_v33 }
  0xc9   :  { %v435_v37 = vadd.f32 %v434_v5, %v346_v35 }
  0xca   :  { %v522_v38 = vmax.f32 %v473_v36, 0.0 }
  0xcb   :  { %v442_v39 = vpop.f32.mrf.mxu1  ;;  %v507_v40 = vmax.f32 %v435_v37, 0.0 }
  0xcc   :  { %v554_v41 = vpack.c.bf16 %v522_v38, %v522_v38 }
  0xcd   :  { %v539_v42 = vpack.c.bf16 %v507_v40, %v507_v40  ;;  %v385_v43 = vpop.f32.mrf.mxu2 }
  0xce   :  { %587 = vst.msk [vmem:[%s1267_s3 + $0x50] sm:$0xf] %vm566_vm2, %v554_v41  ;;  %v386_v44 = vadd.f32 %v1096_v48, %v385_v43  ;;  %v348_v45 = vpop.f32.mrf.mxu0 }
  0xcf   :  { %572 = vst.msk [vmem:[%s1267_s3 + $0x14] sm:$0xf] %vm566_vm2, %v539_v42  ;;  %v349_v46 = vadd.f32 %v1096_v48, %v348_v45 }
  0xd0   :  { %v475_v49 = vadd.f32 %v474_v17, %v386_v44 }
  0xd1   :  { %v438_v50 = vadd.f32 %v437_v15, %v349_v46  ;;  %v484_v15 = vpop.f32.mrf.mxu3 }
  0xd2   :  { %v523_v51 = vmax.f32 %v475_v49, 0.0 }
  0xd3   :  { %v444_v52 = vpop.f32.mrf.mxu1  ;;  %v508_v53 = vmax.f32 %v438_v50, 0.0 }
  0xd4   :  { %v555_v54 = vpack.c.bf16 %v523_v51, %v523_v51 }
  0xd5   :  { %v540_v55 = vpack.c.bf16 %v508_v53, %v508_v53  ;;  %v388_v57 = vpop.f32.mrf.mxu2 }
  0xd6   :  { %588 = vst.msk [vmem:[%s1267_s3 + $0x54] sm:$0xf] %vm566_vm2, %v555_v54  ;;  %v389_v58 = vadd.f32 %v1096_v48, %v388_v57  ;;  %v350_v59 = vpop.f32.mrf.mxu0 }
  0xd7   :  { %573 = vst.msk [vmem:[%s1267_s3 + $0x18] sm:$0xf] %vm566_vm2, %v540_v55  ;;  %v351_v60 = vadd.f32 %v1096_v48, %v350_v59 }
  0xd8   :  { %v478_v61 = vadd.f32 %v477_v32, %v389_v58 }
  0xd9   :  { %v440_v62 = vadd.f32 %v439_v27, %v351_v60  ;;  %v487_v30 = vpop.f32.mrf.mxu3 }
  0xda   :  { %v524_v1 = vmax.f32 %v478_v61, 0.0 }
  0xdb   :  { %v447_v2 = vpop.f32.mrf.mxu1  ;;  %v509_v3 = vmax.f32 %v440_v62, 0.0 }
  0xdc   :  { %v556_v4 = vpack.c.bf16 %v524_v1, %v524_v1 }
  0xdd   :  { %v541_v5 = vpack.c.bf16 %v509_v3, %v509_v3  ;;  %v390_v6 = vpop.f32.mrf.mxu2 }
  0xde   :  { %589 = vst.msk [vmem:[%s1267_s3 + $0x58] sm:$0xf] %vm566_vm2, %v556_v4  ;;  %v391_v7 = vadd.f32 %v1096_v48, %v390_v6  ;;  %v353_v8 = vpop.f32.mrf.mxu0 }
  0xdf   :  { %574 = vst.msk [vmem:[%s1267_s3 + $0x1c] sm:$0xf] %vm566_vm2, %v541_v5  ;;  %v354_v9 = vadd.f32 %v1096_v48, %v353_v8 }
  0xe0   :  { %v480_v10 = vadd.f32 %v479_v47, %v391_v7 }
  0xe1   :  { %v443_v11 = vadd.f32 %v442_v39, %v354_v9  ;;  %v489_v45 = vpop.f32.mrf.mxu3  ;;  %v374_v9 = vadd.f32 %v1096_v48, %v1099_v56 }
  0xe2   :  { %v525_v12 = vmax.f32 %v480_v10, 0.0 }
  0xe3   :  { %v449_v13 = vpop.f32.mrf.mxu1  ;;  %v510_v14 = vmax.f32 %v443_v11, 0.0 }
  0xe4   :  { %v557_v16 = vpack.c.bf16 %v525_v12, %v525_v12 }
  0xe5   :  { %v542_v17 = vpack.c.bf16 %v510_v14, %v510_v14  ;;  %v393_v18 = vpop.f32.mrf.mxu2 }
  0xe6   :  { %590 = vst.msk [vmem:[%s1267_s3 + $0x5c] sm:$0xf] %vm566_vm2, %v557_v16  ;;  %v394_v19 = vadd.f32 %v1096_v48, %v393_v18  ;;  %v355_v20 = vpop.f32.mrf.mxu0 }
  0xe7   :  { %575 = vst.msk [vmem:[%s1267_s3 + $0x20] sm:$0xf] %vm566_vm2, %v542_v17  ;;  %v356_v21 = vadd.f32 %v1096_v48, %v355_v20 }
  0xe8   :  { %v483_v22 = vadd.f32 %v482_v63, %v394_v19 }
  0xe9   :  { %v445_v23 = vadd.f32 %v444_v52, %v356_v21  ;;  %v492_v61 = vpop.f32.mrf.mxu3 }
  0xea   :  { %v526_v24 = vmax.f32 %v483_v22, 0.0 }
  0xeb   :  { %v452_v25 = vpop.f32.mrf.mxu1  ;;  %v511_v26 = vmax.f32 %v445_v23, 0.0 }
  0xec   :  { %v558_v27 = vpack.c.bf16 %v526_v24, %v526_v24  ;;  %v376_v24 = vadd.f32 %v1096_v48, %v1106_v0 }
  0xed   :  { %v543_v28 = vpack.c.bf16 %v511_v26, %v511_v26  ;;  %v395_v29 = vpop.f32.mrf.mxu2 }
  0xee   :  { %591 = vst.msk [vmem:[%s1267_s3 + $0x60] sm:$0xf] %vm566_vm2, %v558_v27  ;;  %v396_v31 = vadd.f32 %v1096_v48, %v395_v29  ;;  %v358_v32 = vpop.f32.mrf.mxu0 }
  0xef   :  { %576 = vst.msk [vmem:[%s1267_s3 + $0x24] sm:$0xf] %vm566_vm2, %v543_v28  ;;  %v359_v33 = vadd.f32 %v1096_v48, %v358_v32 }
  0xf0   :  { %v485_v34 = vadd.f32 %v484_v15, %v396_v31 }
  0xf1   :  { %v448_v35 = vadd.f32 %v447_v2, %v359_v33  ;;  %v494_v14 = vpop.f32.mrf.mxu3 }
  0xf2   :  { %v527_v36 = vmax.f32 %v485_v34, 0.0 }
  0xf3   :  { %v454_v37 = vpop.f32.mrf.mxu1  ;;  %v512_v38 = vmax.f32 %v448_v35, 0.0 }
  0xf4   :  { %v559_v39 = vpack.c.bf16 %v527_v36, %v527_v36 }
  0xf5   :  { %v544_v40 = vpack.c.bf16 %v512_v38, %v512_v38  ;;  %v398_v41 = vpop.f32.mrf.mxu2 }
  0xf6   :  { %592 = vst.msk [vmem:[%s1267_s3 + $0x64] sm:$0xf] %vm566_vm2, %v559_v39  ;;  %v399_v42 = vadd.f32 %v1096_v48, %v398_v41  ;;  %v360_v43 = vpop.f32.mrf.mxu0 }
  0xf7   :  { %577 = vst.msk [vmem:[%s1267_s3 + $0x28] sm:$0xf] %vm566_vm2, %v544_v40  ;;  %v361_v44 = vadd.f32 %v1096_v48, %v360_v43 }
  0xf8   :  { %v488_v46 = vadd.f32 %v487_v30, %v399_v42 }
  0xf9   :  { %v450_v47 = vadd.f32 %v449_v13, %v361_v44  ;;  %v497_v32 = vpop.f32.mrf.mxu3 }
  0xfa   :  { %v528_v49 = vmax.f32 %v488_v46, 0.0 }
  0xfb   :  { %v457_v50 = vpop.f32.mrf.mxu1  ;;  %v513_v51 = vmax.f32 %v450_v47, 0.0 }
  0xfc   :  { %v560_v52 = vpack.c.bf16 %v528_v49, %v528_v49 }
  0xfd   :  { %v545_v53 = vpack.c.bf16 %v513_v51, %v513_v51  ;;  %v400_v54 = vpop.f32.mrf.mxu2 }
  0xfe   :  { %593 = vst.msk [vmem:[%s1267_s3 + $0x68] sm:$0xf] %vm566_vm2, %v560_v52  ;;  %v401_v55 = vadd.f32 %v1096_v48, %v400_v54  ;;  %v363_v57 = vpop.f32.mrf.mxu0 }
  0xff   :  { %578 = vst.msk [vmem:[%s1267_s3 + $0x2c] sm:$0xf] %vm566_vm2, %v545_v53  ;;  %v364_v58 = vadd.f32 %v1096_v48, %v363_v57 }
 0x100   :  { %v490_v59 = vadd.f32 %v489_v45, %v401_v55 }
 0x101   :  { %v453_v60 = vadd.f32 %v452_v25, %v364_v58  ;;  %v499_v46 = vpop.f32.mrf.mxu3 }
 0x102   :  { %v529_v62 = vmax.f32 %v490_v59, 0.0 }
 0x103   :  { %v459_v63 = vpop.f32.mrf.mxu1  ;;  %v514_v1 = vmax.f32 %v453_v60, 0.0 }
 0x104   :  { %v561_v2 = vpack.c.bf16 %v529_v62, %v529_v62 }
 0x105   :  { %v546_v3 = vpack.c.bf16 %v514_v1, %v514_v1  ;;  %v403_v4 = vpop.f32.mrf.mxu2 }
 0x106   :  { %594 = vst.msk [vmem:[%s1267_s3 + $0x6c] sm:$0xf] %vm566_vm2, %v561_v2  ;;  %v404_v5 = vadd.f32 %v1096_v48, %v403_v4  ;;  %v365_v6 = vpop.f32.mrf.mxu0 }
 0x107   :  { %579 = vst.msk [vmem:[%s1267_s3 + $0x30] sm:$0xf] %vm566_vm2, %v546_v3  ;;  %v366_v7 = vadd.f32 %v1096_v48, %v365_v6 }
 0x108   :  { %v493_v8 = vadd.f32 %v492_v61, %v404_v5 }
 0x109   :  { %v455_v10 = vadd.f32 %v454_v37, %v366_v7 }
 0x10a   :  { %v530_v11 = vmax.f32 %v493_v8, 0.0 }
 0x10b   :  { %v462_v12 = vpop.f32.mrf.mxu1  ;;  %v515_v13 = vmax.f32 %v455_v10, 0.0 }
 0x10c   :  { %v463_v15 = vadd.f32 %v462_v12, %v374_v9  ;;  %v562_v16 = vpack.c.bf16 %v530_v11, %v530_v11 }
 0x10d   :  { %v547_v17 = vpack.c.bf16 %v515_v13, %v515_v13  ;;  %v405_v19 = vpop.f32.mrf.mxu2 }
 0x10e   :  { %v518_v18 = vmax.f32 %v463_v15, 0.0  ;;  %595 = vst.msk [vmem:[%s1267_s3 + $0x70] sm:$0xf] %vm566_vm2, %v562_v16  ;;  %v406_v20 = vadd.f32 %v1096_v48, %v405_v19  ;;  %v368_v21 = vpop.f32.mrf.mxu0 }
 0x10f   :  { %580 = vst.msk [vmem:[%s1267_s3 + $0x34] sm:$0xf] %vm566_vm2, %v547_v17  ;;  %v369_v22 = vadd.f32 %v1096_v48, %v368_v21 }
 0x110   :  { %v550_v56 = vpack.c.bf16 %v518_v18, %v518_v18  ;;  %v495_v23 = vadd.f32 %v494_v14, %v406_v20 }
 0x111   :  { %v458_v25 = vadd.f32 %v457_v50, %v369_v22 }
 0x112   :  { %583 = vst.msk [vmem:[%s1267_s3 + $0x40] sm:$0xf] %vm566_vm2, %v550_v56  ;;  %v531_v26 = vmax.f32 %v495_v23, 0.0 }
 0x113   :  { %v464_v27 = vpop.f32.mrf.mxu1  ;;  %v516_v28 = vmax.f32 %v458_v25, 0.0 }
 0x114   :  { %v465_v29 = vadd.f32 %v464_v27, %v376_v24  ;;  %v563_v30 = vpack.c.bf16 %v531_v26, %v531_v26 }
 0x115   :  { %v548_v31 = vpack.c.bf16 %v516_v28, %v516_v28  ;;  %v408_v34 = vpop.f32.mrf.mxu2 }
 0x116   :  { %v519_v33 = vmax.f32 %v465_v29, 0.0  ;;  %596 = vst.msk [vmem:[%s1267_s3 + $0x74] sm:$0xf] %vm566_vm2, %v563_v30  ;;  %v409_v0 = vadd.f32 %v1096_v48, %v408_v34  ;;  %v370_v35 = vpop.f32.mrf.mxu0 }
 0x117   :  { %581 = vst.msk [vmem:[%s1267_s3 + $0x38] sm:$0xf] %vm566_vm2, %v548_v31  ;;  %v371_v37 = vadd.f32 %v1096_v48, %v370_v35 }
 0x118   :  { %v551_v36 = vpack.c.bf16 %v519_v33, %v519_v33  ;;  %v498_v38 = vadd.f32 %v497_v32, %v409_v0 }
 0x119   :  { %v460_v39 = vadd.f32 %v459_v63, %v371_v37 }
 0x11a   :  { %584 = vst.msk [vmem:[%s1267_s3 + $0x44] sm:$0xf] %vm566_vm2, %v551_v36  ;;  %v532_v40 = vmax.f32 %v498_v38, 0.0 }
 0x11b   :  { %v517_v41 = vmax.f32 %v460_v39, 0.0 }
 0x11c   :  { %v564_v42 = vpack.c.bf16 %v532_v40, %v532_v40 }
 0x11d   :  { %v549_v43 = vpack.c.bf16 %v517_v41, %v517_v41  ;;  %v410_v44 = vpop.f32.mrf.mxu2 }
 0x11e   :  { %597 = vst.msk [vmem:[%s1267_s3 + $0x78] sm:$0xf] %vm566_vm2, %v564_v42  ;;  %v411_v45 = vadd.f32 %v1096_v48, %v410_v44 }
 0x11f   :  { %582 = vst.msk [vmem:[%s1267_s3 + $0x3c] sm:$0xf] %vm566_vm2, %v549_v43 }
 0x120   :  { %v500_v47 = vadd.f32 %v499_v46, %v411_v45 }
 0x122   :  { %v533_v49 = vmax.f32 %v500_v47, 0.0 }
 0x124   :  { %v565_v50 = vpack.c.bf16 %v533_v49, %v533_v49 }
 0x126   :  { %598 = vst.msk [vmem:[%s1267_s3 + $0x7c] sm:$0xf] %vm566_vm2, %v565_v50 }

// kernel: recurrent_ref_encoder_forward.6
= control target key start
LH: loop header
LB: loop body
LE: loop exit
PB: predicated region body
PF: predicated region fallthrough
CT: control target
= control target key end

     0   :  { %vm176_vm0 = vcmask 1043456   ;;  %vm163_vm1 = vcmask 588800   ;;  %vm254_vm2 = vcmask 125952   ;;  %s531_s1 = inlined_call_operand.vmem [shape: bf16[200,16], index: 1, kind: input, shape index: {}]   ;;  %s532_s0 = inlined_call_operand.vmem [shape: bf16[64,200], index: 0, kind: input, shape index: {}]   ;;  %s533_s2 = inlined_call_operand.vmem [shape: f32[1,16], index: 2, kind: input, shape index: {}]   ;;  %s534_s3 = inlined_call_operand.vmem [shape: bf16[64,16], index: 3, kind: output, shape index: {}]  }
   0x1   :  { %v366_v0 = vld [vmem:[%s531_s1 + $0x38] sm:$0xff]  ;;  %v47_v1 = vld [vmem:[%s531_s1 + $0x60] sm:$0xf]  ;;  %v365_v3 = vld [vmem:[%s531_s1 + $0x30] sm:$0xff] }
   0x2   :  { %v137_v2 = vunpack.c.l.b16 %v47_v1  ;;  %180 = vmatpush.bf16.msra.mxu0 %v366_v0  ;;  %371 = vmatpush.bf16.msra.mxu2 %v366_v0  ;;  %v370_v6 = vld [vmem:[%s531_s1 + $0x58] sm:$0xff]  ;;  %v364_v7 = vld [vmem:[%s531_s1 + $0x28] sm:$0xff]  ;;  %v369_v8 = vld [vmem:[%s531_s1 + $0x50] sm:$0xff] }
   0x3   :  { %v363_v9 = vld [vmem:[%s531_s1 + $0x20] sm:$0xff]  ;;  %v368_v10 = vld [vmem:[%s531_s1 + $0x48] sm:$0xff]  ;;  %v362_v11 = vld [vmem:[%s531_s1 + $0x18] sm:$0xff] }
   0x4   :  { %v150_v4 = vpack.c.b16 %v137_v2, %v137_v2  ;;  %v367_v12 = vld [vmem:[%s531_s1 + $0x40] sm:$0xff]  ;;  %v361_v13 = vld [vmem:[%s531_s1 + $0x10] sm:$0xff]  ;;  %v279_v15 = vld [vmem:[%s532_s0 + $0x18] sm:$0xf0] }
   0x5   :  { %v353_v14 = vld [vmem:[%s532_s0 + $0x14] sm:$0xf]  ;;  %v351_v16 = vld [vmem:[%s532_s0 + $0x4] sm:$0xf]  ;;  %v271_v17 = vld [vmem:[%s532_s0 + $0x8] sm:$0xf0] }
   0x6   :  { %v178_v5 = vsel %vm176_vm0, %v150_v4, 0  ;;  %181 = vmatpush.bf16.msra.mxu0 %v365_v3  ;;  %372 = vmatpush.bf16.msra.mxu2 %v365_v3  ;;  %v282_v18 = vor.u32 %v353_v14, %v279_v15  ;;  %v360_v19 = vld [vmem:[%s531_s1 + $0x8] sm:$0xff]  ;;  %v274_v20 = vor.u32 %v351_v16, %v271_v17  ;;  %v359_v21 = vld [vmem:[%s531_s1] sm:$0xff]  ;;  %v277_v31 = vld [vmem:[%s532_s0 + $0x10] sm:$0xf] }
   0x7   :  { %379 = vmatpush.bf16.msra.mxu3 %v178_v5  ;;  %212 = vmatpush.bf16.msra.mxu1 %v178_v5  ;;  %v269_v22 = vld [vmem:[%s532_s0] sm:$0xf]  ;;  %v352_v23 = vld [vmem:[%s532_s0 + $0x4] sm:$0xf0]  ;;  %v355_v28 = vld [vmem:[%s532_s0 + $0x24] sm:$0xf] }
   0x8   :  { %v285_v24 = vld [vmem:[%s532_s0 + $0x20] sm:$0xf]  ;;  %v356_v25 = vld [vmem:[%s532_s0 + $0x24] sm:$0xf0]  ;;  %v270_v26 = vor.u32 %v352_v23, %v269_v22  ;;  %v287_v29 = vld [vmem:[%s532_s0 + $0x28] sm:$0xf0] }
   0x9   :  { %v286_v27 = vor.u32 %v356_v25, %v285_v24  ;;  %v290_v30 = vor.u32 %v355_v28, %v287_v29  ;;  %v354_v32 = vld [vmem:[%s532_s0 + $0x14] sm:$0xf0]  ;;  %v293_v33 = vld [vmem:[%s532_s0 + $0x30] sm:$0xf]  ;;  %v357_v37 = vld [vmem:[%s532_s0 + $0x34] sm:$0xf] }
   0xa   :  { %182 = vmatpush.bf16.msra.mxu0 %v364_v7  ;;  %373 = vmatpush.bf16.msra.mxu2 %v364_v7  ;;  %v358_v34 = vld [vmem:[%s532_s0 + $0x34] sm:$0xf0]  ;;  %v278_v35 = vor.u32 %v354_v32, %v277_v31  ;;  %v295_v38 = vld [vmem:[%s532_s0 + $0x38] sm:$0xf0]  ;;  %v384_v40 = vld [vmem:[%s533_s2] ss:$0 sm:$0xff] }
   0xb   :  { %380 = vmatpush.bf16.msra.mxu3 %v370_v6  ;;  %213 = vmatpush.bf16.msra.mxu1 %v370_v6  ;;  %v294_v36 = vor.u32 %v358_v34, %v293_v33  ;;  %v298_v39 = vor.u32 %v357_v37, %v295_v38 }
   0xe   :  { %183 = vmatpush.bf16.msra.mxu0 %v363_v9  ;;  %374 = vmatpush.bf16.msra.mxu2 %v363_v9 }
   0xf   :  { %381 = vmatpush.bf16.msra.mxu3 %v369_v8  ;;  %214 = vmatpush.bf16.msra.mxu1 %v369_v8 }
  0x12   :  { %184 = vmatpush.bf16.msra.mxu0 %v362_v11  ;;  %375 = vmatpush.bf16.msra.mxu2 %v362_v11 }
  0x13   :  { %382 = vmatpush.bf16.msra.mxu3 %v368_v10  ;;  %215 = vmatpush.bf16.msra.mxu1 %v368_v10 }
  0x16   :  { %185 = vmatpush.bf16.msra.mxu0 %v361_v13  ;;  %376 = vmatpush.bf16.msra.mxu2 %v361_v13 }
  0x17   :  { %383 = vmatpush.bf16.msra.mxu3 %v367_v12  ;;  %216 = vmatpush.bf16.msra.mxu1 %v367_v12 }
  0x1a   :  { %348 = vmatmul.msk.bf16.vlgmr.msra.gmra.mxu3 %vm163_vm1, %v282_v18  ;;  %186 = vmatpush.bf16.msra.mxu0 %v360_v19 }
  0x1b   :  { %347 = vmatmul.msk.bf16.vlgmr.msra.gmra.mxu1 %vm163_vm1, %v274_v20  ;;  %377 = vmatpush.bf16.msra.mxu2 %v360_v19 }
  0x1e   :  { %187 = vmatpush.bf16.msra.mxu0 %v359_v21 }
  0x1f   :  { %378 = vmatpush.bf16.msra.mxu2 %v359_v21 }
  0x21   :  { %188 = vmatmul.bf16.vlgmr.msra.gmra.mxu0 %v270_v26 }
  0x22   :  { %198 = vmatmul.bf16.vlgmr.msra.gmra.mxu2 %v286_v27 }
  0x2a   :  { %349 = vmatmul.msk.bf16.gmra.mxu3 %vm163_vm1, %v290_v30 }
  0x31   :  { %193 = vmatmul.bf16.gmra.mxu0 %v278_v35 }
  0x32   :  { %203 = vmatmul.bf16.gmra.mxu2 %v294_v36 }
  0x3a   :  { %350 = vmatmul.msk.bf16.gmra.mxu3 %vm163_vm1, %v298_v39 }
  0x98   :  { %v218_v42 = vpop.f32.mrf.mxu1 }
  0x9d   :  { %v223_v41 = vpop.f32.mrf.mxu3 }
  0x9e   :  { %v189_v43 = vpop.f32.mrf.mxu0 }
  0x9f   :  { %v190_v44 = vadd.f32 %v384_v40, %v189_v43 }
  0xa0   :  { %v220_v51 = vpop.f32.mrf.mxu1 }
  0xa1   :  { %v219_v45 = vadd.f32 %v218_v42, %v190_v44 }
  0xa3   :  { %v238_v46 = vmax.f32 %v219_v45, 0.0 }
  0xa5   :  { %v225_v47 = vpop.f32.mrf.mxu3  ;;  %v246_v48 = vpack.c.bf16 %v238_v46, %v238_v46  ;;  %v199_v49 = vpop.f32.mrf.mxu2 }
  0xa6   :  { %v191_v50 = vpop.f32.mrf.mxu0  ;;  %v200_v53 = vadd.f32 %v384_v40, %v199_v49 }
  0xa7   :  { %255 = vst.msk [vmem:[%s534_s3] sm:$0xf] %vm254_vm2, %v246_v48  ;;  %v192_v52 = vadd.f32 %v384_v40, %v191_v50 }
  0xa9   :  { %v221_v54 = vadd.f32 %v220_v51, %v192_v52 }
  0xab   :  { %v239_v55 = vmax.f32 %v221_v54, 0.0 }
  0xad   :  { %v228_v56 = vpop.f32.mrf.mxu3  ;;  %v247_v57 = vpack.c.bf16 %v239_v55, %v239_v55  ;;  %v201_v59 = vpop.f32.mrf.mxu2 }
  0xae   :  { %v229_v58 = vadd.f32 %v228_v56, %v200_v53  ;;  %v194_v60 = vpop.f32.mrf.mxu0  ;;  %v202_v1 = vadd.f32 %v384_v40, %v201_v59 }
  0xaf   :  { %256 = vst.msk [vmem:[%s534_s3 + $0x4] sm:$0xf] %vm254_vm2, %v247_v57  ;;  %v195_v62 = vadd.f32 %v384_v40, %v194_v60 }
  0xb0   :  { %v242_v61 = vmax.f32 %v229_v58, 0.0 }
  0xb1   :  { %v224_v0 = vadd.f32 %v223_v41, %v195_v62 }
  0xb2   :  { %v250_v63 = vpack.c.bf16 %v242_v61, %v242_v61 }
  0xb3   :  { %v240_v2 = vmax.f32 %v224_v0, 0.0 }
  0xb4   :  { %259 = vst.msk [vmem:[%s534_s3 + $0x10] sm:$0xf] %vm254_vm2, %v250_v63 }
  0xb5   :  { %v230_v3 = vpop.f32.mrf.mxu3  ;;  %v248_v4 = vpack.c.bf16 %v240_v2, %v240_v2  ;;  %v204_v6 = vpop.f32.mrf.mxu2 }
  0xb6   :  { %v231_v5 = vadd.f32 %v230_v3, %v202_v1  ;;  %v196_v7 = vpop.f32.mrf.mxu0  ;;  %v205_v11 = vadd.f32 %v384_v40, %v204_v6 }
  0xb7   :  { %257 = vst.msk [vmem:[%s534_s3 + $0x8] sm:$0xf] %vm254_vm2, %v248_v4  ;;  %v197_v9 = vadd.f32 %v384_v40, %v196_v7 }
  0xb8   :  { %v243_v8 = vmax.f32 %v231_v5, 0.0 }
  0xb9   :  { %v226_v12 = vadd.f32 %v225_v47, %v197_v9 }
  0xba   :  { %v251_v10 = vpack.c.bf16 %v243_v8, %v243_v8 }
  0xbb   :  { %v241_v13 = vmax.f32 %v226_v12, 0.0 }
  0xbc   :  { %260 = vst.msk [vmem:[%s534_s3 + $0x14] sm:$0xf] %vm254_vm2, %v251_v10 }
  0xbd   :  { %v233_v14 = vpop.f32.mrf.mxu3  ;;  %v249_v15 = vpack.c.bf16 %v241_v13, %v241_v13  ;;  %v206_v18 = vpop.f32.mrf.mxu2 }
  0xbe   :  { %v234_v16 = vadd.f32 %v233_v14, %v205_v11  ;;  %v207_v20 = vadd.f32 %v384_v40, %v206_v18 }
  0xbf   :  { %258 = vst.msk [vmem:[%s534_s3 + $0xc] sm:$0xf] %vm254_vm2, %v249_v15 }
  0xc0   :  { %v244_v17 = vmax.f32 %v234_v16, 0.0 }
  0xc2   :  { %v252_v19 = vpack.c.bf16 %v244_v17, %v244_v17 }
  0xc4   :  { %261 = vst.msk [vmem:[%s534_s3 + $0x18] sm:$0xf] %vm254_vm2, %v252_v19 }
  0xc5   :  { %v235_v21 = vpop.f32.mrf.mxu3 }
  0xc6   :  { %v236_v22 = vadd.f32 %v235_v21, %v207_v20 }
  0xc8   :  { %v245_v23 = vmax.f32 %v236_v22, 0.0 }
  0xca   :  { %v253_v24 = vpack.c.bf16 %v245_v23, %v245_v23 }
  0xcc   :  { %262 = vst.msk [vmem:[%s534_s3 + $0x1c] sm:$0xf] %vm254_vm2, %v253_v24 }

// kernel: recurrent_ref_encoder_forward.7
= control target key start
LH: loop header
LB: loop body
LE: loop exit
PB: predicated region body
PF: predicated region fallthrough
CT: control target
= control target key end

     0   :  { %vm244_vm0 = vcmask 261120   ;;  %s1026_s28 = smov 16   ;;  %s1028_s18 = smov 96   ;;  %s1482_s1 = inlined_call_operand.vmem [shape: bf16[288,64], index: 1, kind: input, shape index: {}]   ;;  %s1483_s0 = inlined_call_operand.vmem [shape: bf16[64,288], index: 0, kind: input, shape index: {}]   ;;  %s1484_s2 = inlined_call_operand.vmem [shape: f32[1,64], index: 2, kind: input, shape index: {}]   ;;  %s1485_s3 = inlined_call_operand.vmem [shape: f32[64,16], index: 3, kind: input, shape index: {}, may-alias: {3,5}]   ;;  %s1486_s5 = inlined_call_operand.vmem [shape: f32[64,16], index: 5, kind: output, shape index: {1}, may-alias: {3,5}]   ;;  %s1487_s4 = inlined_call_operand.vmem [shape: bf16[64,16], index: 4, kind: output, shape index: {0}]  }
   0x1   :  { %v929_v0 = vld [vmem:[%s1482_s1 + $0x38] sm:$0xff]  ;;  %v939_v2 = vld [vmem:[%s1482_s1 + $0x88] sm:$0xff]  ;;  %v928_v3 = vld [vmem:[%s1482_s1 + $0x30] sm:$0xff] }
   0x2   :  { %v937_v1 = vld [vmem:[%s1482_s1 + $0x78] sm:$0xff]  ;;  %257 = vmatpush.bf16.msra.mxu0 %v929_v0  ;;  %940 = vmatpush.bf16.msra.mxu3 %v929_v0  ;;  %v936_v4 = vld [vmem:[%s1482_s1 + $0x70] sm:$0xff]  ;;  %v938_v5 = vld [vmem:[%s1482_s1 + $0x80] sm:$0xff] }
   0x3   :  { %948 = vmatpush.bf16.msra.mxu1 %v937_v1  ;;  %321 = vmatpush.bf16.msra.mxu2 %v939_v2  ;;  %v788_v6 = vld [vmem:[%s1483_s0 + $0x8] sm:$0xf]  ;;  %v912_v7 = vld [vmem:[%s1483_s0 + $0x10] sm:$0xf0]  ;;  %v926_v11 = vld [vmem:[%s1482_s1 + $0x20] sm:$0xff] }
   0x4   :  { %v927_v8 = vld [vmem:[%s1482_s1 + $0x28] sm:$0xff]  ;;  %v789_v10 = vor.u32 %v912_v7, %v788_v6  ;;  %v934_v12 = vld [vmem:[%s1482_s1 + $0x60] sm:$0xff]  ;;  %v925_v13 = vld [vmem:[%s1482_s1 + $0x18] sm:$0xff] }
   0x5   :  { %v935_v9 = vld [vmem:[%s1482_s1 + $0x68] sm:$0xff]  ;;  %v933_v14 = vld [vmem:[%s1482_s1 + $0x58] sm:$0xff]  ;;  %v924_v15 = vld [vmem:[%s1482_s1 + $0x10] sm:$0xff] }
   0x6   :  { %258 = vmatpush.bf16.msra.mxu0 %v928_v3  ;;  %941 = vmatpush.bf16.msra.mxu3 %v928_v3  ;;  %v932_v16 = vld [vmem:[%s1482_s1 + $0x50] sm:$0xff]  ;;  %v800_v17 = vld [vmem:[%s1483_s0 + $0x20] sm:$0xf]  ;;  %v915_v18 = vld [vmem:[%s1483_s0 + $0x28] sm:$0xf0] }
   0x7   :  { %949 = vmatpush.bf16.msra.mxu1 %v936_v4  ;;  %322 = vmatpush.bf16.msra.mxu2 %v938_v5  ;;  %v923_v19 = vld [vmem:[%s1482_s1 + $0x8] sm:$0xff]  ;;  %v801_v21 = vor.u32 %v915_v18, %v800_v17  ;;  %v922_v22 = vld [vmem:[%s1482_s1] sm:$0xff]  ;;  %v792_v23 = vld [vmem:[%s1483_s0 + $0x18] sm:$0xf] }
   0x8   :  { %v931_v20 = vld [vmem:[%s1482_s1 + $0x48] sm:$0xff]  ;;  %v914_v24 = vld [vmem:[%s1483_s0 + $0x20] sm:$0xf0]  ;;  %v780_v25 = vld [vmem:[%s1483_s0] sm:$0xf] }
   0x9   :  { %v911_v26 = vld [vmem:[%s1483_s0 + $0x8] sm:$0xf0]  ;;  %v930_v27 = vld [vmem:[%s1482_s1 + $0x40] sm:$0xff]  ;;  %v913_v28 = vld [vmem:[%s1483_s0 + $0x1c] sm:$0xf]  ;;  %v793_v30 = vor.u32 %v914_v24, %v792_v23 }
   0xa   :  { %259 = vmatpush.bf16.msra.mxu0 %v927_v8  ;;  %942 = vmatpush.bf16.msra.mxu3 %v927_v8  ;;  %v794_v29 = vld [vmem:[%s1483_s0 + $0x24] sm:$0xf0]  ;;  %v781_v31 = vor.u32 %v911_v26, %v780_v25  ;;  %v812_v33 = vld [vmem:[%s1483_s0 + $0x38] sm:$0xf]  ;;  %v918_v34 = vld [vmem:[%s1483_s0 + $0x40] sm:$0xf0] }
   0xb   :  { %950 = vmatpush.bf16.msra.mxu1 %v935_v9  ;;  %898 = vmatmul.msk.bf16.vlgmr.msra.gmra.mxu2 %vm244_vm0, %v789_v10  ;;  %v797_v32 = vor.u32 %v913_v28, %v794_v29  ;;  %v813_v35 = vor.u32 %v918_v34, %v812_v33  ;;  %v804_v36 = vld [vmem:[%s1483_s0 + $0x30] sm:$0xf]  ;;  %v917_v37 = vld [vmem:[%s1483_s0 + $0x38] sm:$0xf0]  ;;  %v916_v38 = vld [vmem:[%s1483_s0 + $0x34] sm:$0xf] }
   0xc   :  { %v806_v39 = vld [vmem:[%s1483_s0 + $0x3c] sm:$0xf0]  ;;  %v805_v40 = vor.u32 %v917_v37, %v804_v36  ;;  %v824_v42 = vld [vmem:[%s1483_s0 + $0x50] sm:$0xf]  ;;  %v921_v43 = vld [vmem:[%s1483_s0 + $0x58] sm:$0xf0] }
   0xd   :  { %v809_v41 = vor.u32 %v916_v38, %v806_v39  ;;  %v910_v44 = vld [vmem:[%s1483_s0 + $0x4] sm:$0xf]  ;;  %v782_v45 = vld [vmem:[%s1483_s0 + $0xc] sm:$0xf0]  ;;  %v825_v46 = vor.u32 %v921_v43, %v824_v42  ;;  %v816_v48 = vld [vmem:[%s1483_s0 + $0x48] sm:$0xf] }
   0xe   :  { %260 = vmatpush.bf16.msra.mxu0 %v926_v11  ;;  %943 = vmatpush.bf16.msra.mxu3 %v926_v11  ;;  %v785_v47 = vor.u32 %v910_v44, %v782_v45  ;;  %v920_v49 = vld [vmem:[%s1483_s0 + $0x50] sm:$0xf0]  ;;  %v919_v50 = vld [vmem:[%s1483_s0 + $0x4c] sm:$0xf]  ;;  %v818_v51 = vld [vmem:[%s1483_s0 + $0x54] sm:$0xf0] }
   0xf   :  { %951 = vmatpush.bf16.msra.mxu1 %v934_v12  ;;  %v817_v52 = vor.u32 %v920_v49, %v816_v48  ;;  %v821_v53 = vor.u32 %v919_v50, %v818_v51  ;;  %v960_v58 = vld [vmem:[%s1484_s2] ss:$0 sm:$0xff]  ;;  %s1025_s0 = smov 80   ;;  %v505_v49 = vld [vmem:[%s1485_s3 + $0x8] sm:$0xff]  ;;  %v510_v50 = vld [vmem:[%s1485_s3 + $0x30] sm:$0xff] }
  0x10   :  { %v504_v43 = vld [vmem:[%s1485_s3] sm:$0xff]  ;;  %v506_v51 = vld [vmem:[%s1485_s3 + $0x10] sm:$0xff] }
  0x12   :  { %261 = vmatpush.bf16.msra.mxu0 %v925_v13  ;;  %944 = vmatpush.bf16.msra.mxu3 %v925_v13 }
  0x13   :  { %952 = vmatpush.bf16.msra.mxu1 %v933_v14 }
  0x16   :  { %262 = vmatpush.bf16.msra.mxu0 %v924_v15  ;;  %945 = vmatpush.bf16.msra.mxu3 %v924_v15 }
  0x17   :  { %953 = vmatpush.bf16.msra.mxu1 %v932_v16 }
  0x1a   :  { %263 = vmatpush.bf16.msra.mxu0 %v923_v19  ;;  %946 = vmatpush.bf16.msra.mxu3 %v923_v19 }
  0x1b   :  { %954 = vmatpush.bf16.msra.mxu1 %v931_v20  ;;  %899 = vmatmul.msk.bf16.gmra.mxu2 %vm244_vm0, %v801_v21 }
  0x1e   :  { %264 = vmatpush.bf16.msra.mxu0 %v922_v22  ;;  %947 = vmatpush.bf16.msra.mxu3 %v922_v22 }
  0x1f   :  { %955 = vmatpush.bf16.msra.mxu1 %v930_v27 }
  0x21   :  { %270 = vmatmul.bf16.vlgmr.msra.gmra.mxu3 %v793_v30  ;;  %265 = vmatmul.bf16.vlgmr.msra.gmra.mxu0 %v781_v31 }
  0x22   :  { %286 = vmatpush.bf16.msrb.mxu0 %v937_v1  ;;  %299 = vmatmul.bf16.vlgmr.msra.gmra.mxu1 %v797_v32 }
  0x26   :  { %287 = vmatpush.bf16.msrb.mxu0 %v936_v4 }
  0x2a   :  { %288 = vmatpush.bf16.msrb.mxu0 %v935_v9 }
  0x2b   :  { %900 = vmatmul.msk.bf16.gmra.mxu2 %vm244_vm0, %v813_v35 }
  0x2e   :  { %289 = vmatpush.bf16.msrb.mxu0 %v934_v12 }
  0x31   :  { %275 = vmatmul.bf16.gmra.mxu3 %v805_v40 }
  0x32   :  { %290 = vmatpush.bf16.msrb.mxu0 %v933_v14  ;;  %304 = vmatmul.bf16.gmra.mxu1 %v809_v41 }
  0x36   :  { %291 = vmatpush.bf16.msrb.mxu0 %v932_v16 }
  0x3a   :  { %292 = vmatpush.bf16.msrb.mxu0 %v931_v20 }
  0x3b   :  { %901 = vmatmul.msk.bf16.gmra.mxu2 %vm244_vm0, %v825_v46 }
  0x3e   :  { %293 = vmatpush.bf16.msrb.mxu0 %v930_v27 }
  0x41   :  { %294 = vmatmul.bf16.vlgmr.msrb.gmra.mxu0 %v785_v47  ;;  %280 = vmatmul.bf16.gmra.mxu3 %v817_v52  ;;  %v507_v47 = vld [vmem:[%s1485_s3 + $0x18] sm:$0xff]  ;;  %v508_v52 = vld [vmem:[%s1485_s3 + $0x20] sm:$0xff] }
  0x42   :  { %309 = vmatmul.bf16.gmra.mxu1 %v821_v53  ;;  %v509_v53 = vld [vmem:[%s1485_s3 + $0x28] sm:$0xff] }
  0x8e   :  { %v324_v54 = vpop.f32.mrf.mxu2 }
  0x96   :  { %v326_v55 = vpop.f32.mrf.mxu2 }
  0x9e   :  { %v329_v56 = vpop.f32.mrf.mxu2  ;;  %v266_v0 = vpop.f32.mrf.mxu0 }
  0x9f   :  { %v300_v57 = vpop.f32.mrf.mxu1  ;;  %v267_v15 = vadd.f32 %v960_v58, %v266_v0 }
  0xa4   :  { %v271_v59 = vpop.f32.mrf.mxu3 }
  0xa5   :  { %v272_v60 = vadd.f32 %v960_v58, %v271_v59 }
  0xa6   :  { %v331_v63 = vpop.f32.mrf.mxu2  ;;  %v268_v9 = vpop.f32.mrf.mxu0 }
  0xa7   :  { %v301_v61 = vadd.f32 %v300_v57, %v272_v60  ;;  %v302_v62 = vpop.f32.mrf.mxu1  ;;  %v269_v26 = vadd.f32 %v960_v58, %v268_v9 }
  0xa9   :  { %v1192_v1 = vadd.f32 %v329_v56, %v301_v61 }
  0xab   :  { %961 = vtanh.f32 %v1192_v1 }
  0xac   :  { %v273_v2 = vpop.f32.mrf.mxu3 }
  0xad   :  { %v274_v3 = vadd.f32 %v960_v58, %v273_v2 }
  0xae   :  { %v334_v8 = vpop.f32.mrf.mxu2 }
  0xaf   :  { %v303_v4 = vadd.f32 %v302_v62, %v274_v3  ;;  %v305_v5 = vpop.f32.mrf.mxu1 }
  0xb1   :  { %v962_v6 = vpop.eup %961  ;;  %v1195_v7 = vadd.f32 %v331_v63, %v303_v4 }
  0xb2   :  { %564 = vrot.lane.b32.xlu1 %v962_v6, %s1025_s0 }
  0xb3   :  { %963 = vtanh.f32 %v1195_v7  ;;  %v905_v0 = vmul.f32 -1.442695, %v1195_v7 }
  0xb4   :  { %v276_v10 = vpop.f32.mrf.mxu3 }
  0xb5   :  { %v277_v11 = vadd.f32 %v960_v58, %v276_v10 }
  0xb6   :  { %v336_v20 = vpop.f32.mrf.mxu2 }
  0xb7   :  { %v306_v12 = vadd.f32 %v305_v5, %v277_v11  ;;  %v307_v16 = vpop.f32.mrf.mxu1 }
  0xb9   :  { %v964_v13 = vpop.eup %963  ;;  %v1199_v14 = vadd.f32 %v334_v8, %v306_v12 }
  0xba   :  { %566 = vrot.lane.b32.xlu1 %v964_v13, %s1025_s0 }
  0xbb   :  { %965 = vtanh.f32 %v1199_v14  ;;  %v906_v9 = vmul.f32 -1.442695, %v1199_v14 }
  0xbc   :  { %v278_v19 = vpop.f32.mrf.mxu3 }
  0xbd   :  { %v279_v21 = vadd.f32 %v960_v58, %v278_v19 }
  0xbe   :  { %v295_v17 = vpop.f32.mrf.mxu0  ;;  %v339_v34 = vpop.f32.mrf.mxu2 }
  0xbf   :  { %v296_v18 = vadd.f32 %v295_v17, %v267_v15  ;;  %v308_v23 = vadd.f32 %v307_v16, %v279_v21  ;;  %v310_v29 = vpop.f32.mrf.mxu1 }
  0xc1   :  { %v325_v22 = vadd.f32 %v324_v54, %v296_v18  ;;  %v966_v24 = vpop.eup %965  ;;  %v337_v25 = vadd.f32 %v336_v20, %v308_v23  ;;  %v511_v54 = vld [vmem:[%s1485_s3 + $0x38] sm:$0xff]  ;;  %s1027_s3 = smov 112  }
  0xc2   :  { %568 = vrot.lane.b32.xlu2 %v966_v24, %s1025_s0 }
  0xc3   :  { %967 = vtanh.f32 %v325_v22  ;;  %v907_v56 = vmul.f32 -1.442695, %v337_v25  ;;  %v902_v60 = vmul.f32 -1.442695, %v325_v22 }
  0xc4   :  { %969 = vtanh.f32 %v337_v25  ;;  %v281_v30 = vpop.f32.mrf.mxu3 }
  0xc5   :  { %v282_v31 = vadd.f32 %v960_v58, %v281_v30 }
  0xc6   :  { %v297_v27 = vpop.f32.mrf.mxu0  ;;  %v341_v44 = vpop.f32.mrf.mxu2 }
  0xc7   :  { %v298_v28 = vadd.f32 %v297_v27, %v269_v26  ;;  %v311_v35 = vadd.f32 %v310_v29, %v282_v31  ;;  %v312_v41 = vpop.f32.mrf.mxu1 }
  0xc9   :  { %v968_v32 = vpop.eup %967  ;;  %v327_v33 = vadd.f32 %v326_v55, %v298_v28  ;;  %v340_v37 = vadd.f32 %v339_v34, %v311_v35  ;;  %v904_v55 = vmul.f32 -1.442695, %v1192_v1 }
  0xca   :  { %560 = vrot.lane.b32.xlu0 %v968_v32, %s1025_s0  ;;  %v970_v36 = vpop.eup %969 }
  0xcb   :  { %971 = vtanh.f32 %v327_v33  ;;  %570 = vrot.lane.b32.xlu2 %v970_v36, %s1025_s0  ;;  %v903_v2 = vmul.f32 -1.442695, %v327_v33  ;;  %v908_v10 = vmul.f32 -1.442695, %v340_v37 }
  0xcc   :  { %v283_v38 = vpop.f32.mrf.mxu3  ;;  %973 = vtanh.f32 %v340_v37 }
  0xcd   :  { %v284_v39 = vadd.f32 %v960_v58, %v283_v38 }
  0xcf   :  { %v313_v42 = vadd.f32 %v312_v41, %v284_v39 }
  0xd1   :  { %v972_v40 = vpop.eup %971  ;;  %v1210_v45 = vadd.f32 %v341_v44, %v313_v42 }
  0xd2   :  { %562 = vrot.lane.b32.xlu0 %v972_v40, %s1025_s0  ;;  %v974_v46 = vpop.eup %973 }
  0xd3   :  { %520 = vrot.lane.b32.xlu2 %v504_v43, %s1026_s28  ;;  %975 = vtanh.f32 %v1210_v45  ;;  %v909_v23 = vmul.f32 -1.442695, %v1210_v45 }
  0xd4   :  { %977 = vpow2.f32 %v904_v55 }
  0xd5   :  { %979 = vpow2.f32 %v907_v56 }
  0xd9   :  { %v976_v48 = vpop.eup %975 }
  0xda   :  { %572 = vrot.lane.b32.xlu0 %v974_v46, %s1025_s0  ;;  %574 = vrot.lane.b32.xlu1 %v976_v48, %s1025_s0  ;;  %v978_v57 = vpop.eup %977 }
  0xdb   :  { %526 = vrot.lane.b32.xlu2 %v507_v47, %s1026_s28  ;;  %v370_v58 = vadd.f32 1.0, %v978_v57  ;;  %v980_v59 = vpop.eup %979 }
  0xdc   :  { %v373_v61 = vadd.f32 1.0, %v980_v59 }
  0xdd   :  { %981 = vrcp.f32 %v370_v58  ;;  %v417_v15 = vand.u32 2147483648, %v370_v58  ;;  %vm411_vm2 = vweird.f32 %v370_v58  ;;  %v415_v16 = vand.u32 2147483647, %v370_v58 }
  0xde   :  { %983 = vpow2.f32 %v902_v60  ;;  %v462_v30 = vand.u32 2147483648, %v373_v61  ;;  %vm456_vm6 = vweird.f32 %v373_v61  ;;  %v460_v32 = vand.u32 2147483647, %v373_v61 }
  0xdf   :  { %985 = vrcp.f32 %v373_v61  ;;  %v418_v21 = vor.u32 1.1754944e-38, %v417_v15  ;;  %vm416_vm4 = vcmp.eq.f32.partialorder %v415_v16, 8.507059e+37 }
  0xe0   :  { %987 = vpow2.f32 %v905_v0  ;;  %v463_v37 = vor.u32 1.1754944e-38, %v462_v30  ;;  %vm461_vm8 = vcmp.eq.f32.partialorder %v460_v32, 8.507059e+37 }
  0xe1   :  { %989 = vpow2.f32 %v903_v2 }
  0xe2   :  { %522 = vrot.lane.b32.xlu0 %v505_v49, %s1026_s28  ;;  %524 = vrot.lane.b32.xlu1 %v506_v51, %s1026_s28 }
  0xe3   :  { %532 = vrot.lane.b32.xlu2 %v510_v50, %s1026_s28  ;;  %v982_v62 = vpop.eup %981 }
  0xe4   :  { %v407_v63 = vmul.f32 %v982_v62, %v370_v58  ;;  %v984_v3 = vpop.eup %983  ;;  %vm412_vm1 = vweird.f32 %v982_v62 }
  0xe5   :  { %v986_v5 = vpop.eup %985  ;;  %v1246_v1 = vadd.f32 1.0, %v984_v3  ;;  %vm413_vm3 = vmor %vm411_vm2, %vm412_vm1 }
  0xe6   :  { %v408_v4 = vsub.f32 1.0, %v407_v63  ;;  %v452_v6 = vmul.f32 %v986_v5, %v373_v61  ;;  %v988_v11 = vpop.eup %987  ;;  %vm457_vm5 = vweird.f32 %v986_v5 }
  0xe7   :  { %991 = vrcp.f32 %v1246_v1  ;;  %v990_v7 = vpop.eup %989  ;;  %v1250_v17 = vadd.f32 1.0, %v988_v11  ;;  %vm458_vm7 = vmor %vm456_vm6, %vm457_vm5  ;;  %vm381_vm10 = vweird.f32 %v1246_v1 }
  0xe8   :  { %v409_v8 = vmul.f32 %v982_v62, %v408_v4  ;;  %v453_v12 = vsub.f32 1.0, %v452_v6  ;;  %993 = vpow2.f32 %v906_v9  ;;  %v1254_v19 = vadd.f32 1.0, %v990_v7 }
  0xe9   :  { %995 = vpow2.f32 %v908_v10  ;;  %vm426_vm15 = vweird.f32 %v1250_v17  ;;  %v430_v9 = vand.u32 2147483647, %v1250_v17 }
  0xea   :  { %528 = vrot.lane.b32.xlu0 %v508_v52, %s1026_s28  ;;  %530 = vrot.lane.b32.xlu1 %v509_v53, %s1026_s28  ;;  %v410_v13 = vadd.f32 %v982_v62, %v409_v8  ;;  %v454_v14 = vmul.f32 %v986_v5, %v453_v12  ;;  %997 = vrcp.f32 %v1250_v17  ;;  %v387_v53 = vand.u32 2147483648, %v1246_v1 }
  0xeb   :  { %999 = vrcp.f32 %v1254_v19  ;;  %v402_v6 = vand.u32 2147483648, %v1254_v19  ;;  %vm396_vm1 = vweird.f32 %v1254_v19  ;;  %v400_v10 = vand.u32 2147483647, %v1254_v19 }
  0xec   :  { %v414_v20 = vsel %vm413_vm3, %v982_v62, %v410_v13  ;;  %v455_v27 = vadd.f32 %v986_v5, %v454_v14  ;;  %1001 = vpow2.f32 %v909_v23  ;;  %v388_v60 = vor.u32 1.1754944e-38, %v387_v53 }
  0xed   :  { %v992_v22 = vpop.eup %991  ;;  %v1258_v25 = vsel %vm416_vm4, %v418_v21, %v414_v20  ;;  %v403_v14 = vor.u32 1.1754944e-38, %v402_v6  ;;  %vm431_vm4 = vcmp.eq.f32.partialorder %v430_v9, 8.507059e+37  ;;  %vm401_vm5 = vcmp.eq.f32.partialorder %v400_v10, 8.507059e+37 }
  0xee   :  { %v994_v26 = vpop.eup %993  ;;  %v377_v31 = vmul.f32 %v992_v22, %v1246_v1  ;;  %v459_v35 = vsel %vm458_vm7, %v986_v5, %v455_v27  ;;  %vm382_vm9 = vweird.f32 %v992_v22 }
  0xef   :  { %v996_v29 = vpop.eup %995  ;;  %v1264_v33 = vadd.f32 1.0, %v994_v26  ;;  %v1273_v41 = vsel %vm461_vm8, %v463_v37, %v459_v35  ;;  %vm383_vm11 = vmor %vm381_vm10, %vm382_vm9 }
  0xf0   :  { %v1266_v34 = vadd.f32 1.0, %v996_v29  ;;  %v1268_v36 = vpop.eup %997  ;;  %v378_v39 = vsub.f32 1.0, %v377_v31 }
  0xf1   :  { %v1270_v40 = vpop.eup %999  ;;  %1003 = vrcp.f32 %v1264_v33  ;;  %v422_v43 = vmul.f32 %v1268_v36, %v1250_v17  ;;  %vm427_vm13 = vweird.f32 %v1268_v36  ;;  %vm441_vm7 = vweird.f32 %v1264_v33 }
  0xf2   :  { %534 = vrot.lane.b32.xlu0 %v511_v54, %s1026_s28  ;;  %1005 = vrcp.f32 %v1266_v34  ;;  %v1002_v44 = vpop.eup %1001  ;;  %v379_v45 = vmul.f32 %v992_v22, %v378_v39  ;;  %v392_v46 = vmul.f32 %v1270_v40, %v1254_v19  ;;  %v385_v54 = vand.u32 2147483647, %v1246_v1  ;;  %vm1310_vm0 = vmor %vm426_vm15, %vm427_vm13 }
  0xf3   :  { %v1282_v47 = vadd.f32 1.0, %v1002_v44  ;;  %v423_v48 = vsub.f32 1.0, %v422_v43  ;;  %vm397_vm14 = vweird.f32 %v1270_v40  ;;  %v432_v1 = vand.u32 2147483648, %v1250_v17 }
  0xf4   :  { %v380_v50 = vadd.f32 %v992_v22, %v379_v45  ;;  %v393_v51 = vsub.f32 1.0, %v392_v46  ;;  %vm386_vm12 = vcmp.eq.f32.partialorder %v385_v54, 8.507059e+37  ;;  %vm398_vm2 = vmor %vm396_vm1, %vm397_vm14  ;;  %v477_v29 = vand.u32 2147483648, %v1266_v34 }
  0xf5   :  { %1007 = vrcp.f32 %v1282_v47  ;;  %v424_v56 = vmul.f32 %v1268_v36, %v423_v48  ;;  %v433_v16 = vor.u32 1.1754944e-38, %v432_v1  ;;  %v445_v30 = vand.u32 2147483647, %v1264_v33 }
  0xf6   :  { %v384_v57 = vsel %vm383_vm11, %v992_v22, %v380_v50  ;;  %v394_v59 = vmul.f32 %v1270_v40, %v393_v51  ;;  %vm471_vm9 = vweird.f32 %v1266_v34  ;;  %v475_v31 = vand.u32 2147483647, %v1266_v34 }
  0xf7   :  { %v1284_v49 = vpop.eup %1003  ;;  %v1298_v62 = vsel %vm386_vm12, %v388_v60, %v384_v57  ;;  %v425_v63 = vadd.f32 %v1268_v36, %v424_v56  ;;  %vm446_vm11 = vcmp.eq.f32.partialorder %v445_v30, 8.507059e+37  ;;  %v492_v44 = vand.u32 2147483648, %v1282_v47 }
  0xf8   :  { %v1286_v52 = vpop.eup %1005  ;;  %v437_v55 = vmul.f32 %v1284_v49, %v1264_v33  ;;  %v395_v4 = vadd.f32 %v1270_v40, %v394_v59  ;;  %vm442_vm3 = vweird.f32 %v1284_v49  ;;  %vm476_vm12 = vcmp.eq.f32.partialorder %v475_v31, 8.507059e+37 }
  0xf9   :  { %v467_v58 = vmul.f32 %v1286_v52, %v1266_v34  ;;  %v429_v12 = vsel %vm1310_vm0, %v1268_v36, %v425_v63  ;;  %vm472_vm6 = vweird.f32 %v1286_v52  ;;  %vm443_vm8 = vmor %vm441_vm7, %vm442_vm3  ;;  %vm486_vm14 = vweird.f32 %v1282_v47 }
  0xfa   :  { %v438_v61 = vsub.f32 1.0, %v437_v55  ;;  %v399_v7 = vsel %vm398_vm2, %v1270_v40, %v395_v4  ;;  %v1328_v20 = vsel %vm431_vm4, %v433_v16, %v429_v12  ;;  %vm473_vm10 = vmor %vm471_vm9, %vm472_vm6  ;;  %v490_v45 = vand.u32 2147483647, %v1282_v47 }
  0xfb   :  { %v468_v3 = vsub.f32 1.0, %v467_v58  ;;  %v1305_v5 = vpop.eup %1007  ;;  %v1331_v21 = vsel %vm401_vm5, %v403_v14, %v399_v7  ;;  %vm761_vm1 = vcmask 130048   ;;  %vm720_vm2 = vcmask 125952  }
  0xfc   :  { %v439_v11 = vmul.f32 %v1284_v49, %v438_v61  ;;  %v482_v15 = vmul.f32 %v1305_v5, %v1282_v47  ;;  %vm487_vm13 = vweird.f32 %v1305_v5  ;;  %vm491_vm0 = vcmp.eq.f32.partialorder %v490_v45, 8.507059e+37 }
  0xfd   :  { %v469_v13 = vmul.f32 %v1286_v52, %v468_v3  ;;  %vm488_vm15 = vmor %vm486_vm14, %vm487_vm13 }
  0xfe   :  { %v440_v19 = vadd.f32 %v1284_v49, %v439_v11  ;;  %v483_v27 = vsub.f32 1.0, %v482_v15 }
 0x100   :  { %v444_v32 = vsel %vm443_vm8, %v1284_v49, %v440_v19  ;;  %v484_v36 = vmul.f32 %v1305_v5, %v483_v27 }
 0x102   :  { %v485_v43 = vadd.f32 %v1305_v5, %v484_v36 }
 0x104   :  { %v489_v46 = vsel %vm488_vm15, %v1305_v5, %v485_v43 }
 0x11c   :  { %v1252_v18 = vpop.permute.xlu2 %568 }
 0x124   :  { %v565_v24 = vpop.permute.xlu1 %564 }
 0x125   :  { %v586_v28 = vmul.f32 %v565_v24, %v1258_v25  ;;  %v571_v38 = vpop.permute.xlu2 %570  ;;  %v470_v24 = vadd.f32 %v1286_v52, %v469_v13 }
 0x126   :  { %v589_v42 = vmul.f32 %v571_v38, %v1273_v41  ;;  %v478_v38 = vor.u32 1.1754944e-38, %v477_v29 }
 0x127   :  { %604 = vrot.lane.b32.xlu0 %v586_v28, %s1026_s28  ;;  %v447_v28 = vand.u32 2147483648, %v1264_v33  ;;  %v474_v35 = vsel %vm473_vm10, %v1286_v52, %v470_v24 }
 0x128   :  { %v1353_v34 = vsel %vm476_vm12, %v478_v38, %v474_v35 }
 0x129   :  { %v448_v37 = vor.u32 1.1754944e-38, %v447_v28 }
 0x12b   :  { %v1351_v33 = vsel %vm446_vm11, %v448_v37, %v444_v32 }
 0x12c   :  { %v567_v17 = vpop.permute.xlu1 %566  ;;  %v588_v40 = vmul.f32 %v1252_v18, %v1351_v33  ;;  %v493_v18 = vor.u32 1.1754944e-38, %v492_v44 }
 0x12d   :  { %v587_v23 = vmul.f32 %v567_v17, %v1328_v20  ;;  %v521_v52 = vpop.permute.xlu2 %520 }
 0x12e   :  { %v1366_v49 = vsel %vm491_vm0, %v493_v18, %v489_v46  ;;  %v544_v11 = vmul.f32 %v521_v52, %v1298_v62 }
 0x12f   :  { %610 = vrot.lane.b32.xlu0 %v589_v42, %s1026_s28 }
 0x135   :  { %v527_v47 = vpop.permute.xlu2 %526 }
 0x136   :  { %v547_v14 = vmul.f32 %v527_v47, %v1328_v20 }
 0x13c   :  { %v561_v0 = vpop.permute.xlu0 %560 }
 0x13d   :  { %v584_v2 = vmul.f32 %v561_v0, %v1298_v62  ;;  %v533_v56 = vpop.permute.xlu2 %532 }
 0x13f   :  { %600 = vrot.lane.b32.xlu1 %v584_v2, %s1026_s28 }
 0x144   :  { %v563_v22 = vpop.permute.xlu0 %562 }
 0x145   :  { %v585_v26 = vmul.f32 %v563_v22, %v1331_v21 }
 0x147   :  { %602 = vrot.lane.b32.xlu2 %v585_v26, %s1026_s28  ;;  %606 = vrot.lane.b32.xlu1 %v587_v23, %s1026_s28  ;;  %v550_v26 = vmul.f32 %v533_v56, %v1353_v34 }
 0x14c   :  { %v573_v39 = vpop.permute.xlu0 %572  ;;  %v575_v48 = vpop.permute.xlu1 %574 }
 0x14d   :  { %v590_v42 = vmul.f32 %v573_v39, %v1353_v34  ;;  %v591_v50 = vmul.f32 %v575_v48, %v1366_v49 }
 0x14f   :  { %608 = vrot.lane.b32.xlu2 %v588_v40, %s1026_s28  ;;  %612 = vrot.lane.b32.xlu1 %v590_v42, %s1026_s28 }
 0x154   :  { %v523_v51 = vpop.permute.xlu0 %522  ;;  %v525_v55 = vpop.permute.xlu1 %524 }
 0x155   :  { %v546_v57 = vmul.f32 %v525_v55, %v1258_v25  ;;  %v545_v60 = vmul.f32 %v523_v51, %v1331_v21 }
 0x157   :  { %614 = vrot.lane.b32.xlu2 %v591_v50, %s1026_s28 }
 0x15c   :  { %v529_v53 = vpop.permute.xlu0 %528  ;;  %v531_v61 = vpop.permute.xlu1 %530 }
 0x15d   :  { %v549_v2 = vmul.f32 %v531_v61, %v1273_v41  ;;  %v548_v1 = vmul.f32 %v529_v53, %v1351_v33 }
 0x164   :  { %v535_v54 = vpop.permute.xlu0 %534 }
 0x165   :  { %v551_v12 = vmul.f32 %v535_v54, %v1366_v49 }
 0x199   :  { %v605_v58 = vpop.permute.xlu0 %604 }
 0x19a   :  { %v626_v59 = vadd.f32 %v605_v58, %v546_v57 }
 0x19c   :  { %1009 = vtanh.f32 %v626_v59 }
 0x1a1   :  { %v603_v63 = vpop.permute.xlu2 %602  ;;  %v611_v3 = vpop.permute.xlu0 %610 }
 0x1a2   :  { %v625_v0 = vadd.f32 %v603_v63, %v545_v60  ;;  %v1010_v4 = vpop.eup %1009  ;;  %v1373_v5 = vadd.f32 %v611_v3, %v549_v2 }
 0x1a3   :  { %652 = vrot.lane.b32.xlu2 %v1010_v4, %s1026_s28 }
 0x1a4   :  { %1011 = vtanh.f32 %v625_v0 }
 0x1a5   :  { %1013 = vtanh.f32 %v1373_v5 }
 0x1a9   :  { %v609_v6 = vpop.permute.xlu2 %608 }
 0x1aa   :  { %v1012_v8 = vpop.eup %1011  ;;  %v628_v9 = vadd.f32 %v609_v6, %v548_v1 }
 0x1ab   :  { %650 = vrot.lane.b32.xlu1 %v1012_v8, %s1026_s28  ;;  %v1014_v10 = vpop.eup %1013 }
 0x1ac   :  { %1015 = vtanh.f32 %v628_v9  ;;  %658 = vrot.lane.b32.xlu2 %v1014_v10, %s1026_s28 }
 0x1b1   :  { %v615_v13 = vpop.permute.xlu2 %614  ;;  %v601_v7 = vpop.permute.xlu1 %600 }
 0x1b2   :  { %v1016_v15 = vpop.eup %1015  ;;  %v1382_v16 = vadd.f32 %v615_v13, %v551_v12  ;;  %v624_v17 = vadd.f32 %v601_v7, %v544_v11 }
 0x1b3   :  { %656 = vrot.lane.b32.xlu1 %v1016_v15, %s1026_s28 }
 0x1b4   :  { %1017 = vtanh.f32 %v1382_v16  ;;  %739 = vrot.lane.b32.xlu2 %v625_v0, %s1027_s3 }
 0x1b5   :  { %1019 = vtanh.f32 %v624_v17 }
 0x1b9   :  { %v607_v19 = vpop.permute.xlu1 %606 }
 0x1ba   :  { %v1018_v22 = vpop.eup %1017  ;;  %v627_v23 = vadd.f32 %v607_v19, %v547_v14 }
 0x1bb   :  { %v1020_v24 = vpop.eup %1019  ;;  %662 = vrot.lane.b32.xlu1 %v1018_v22, %s1026_s28 }
 0x1bc   :  { %1021 = vtanh.f32 %v627_v23  ;;  %648 = vrot.lane.b32.xlu0 %v1020_v24, %s1026_s28  ;;  %745 = vrot.lane.b32.xlu2 %v628_v9, %s1027_s3 }
 0x1c1   :  { %v613_v27 = vpop.permute.xlu1 %612 }
 0x1c2   :  { %v1022_v28 = vpop.eup %1021  ;;  %v630_v29 = vadd.f32 %v613_v27, %v550_v26 }
 0x1c3   :  { %737 = vrot.lane.b32.xlu1 %v624_v17, %s1027_s3 }
 0x1c4   :  { %1023 = vtanh.f32 %v630_v29  ;;  %654 = vrot.lane.b32.xlu0 %v1022_v28, %s1026_s28 }
 0x1ca   :  { %v1024_v30 = vpop.eup %1023 }
 0x1cb   :  { %743 = vrot.lane.b32.xlu1 %v627_v23, %s1027_s3 }
 0x1cc   :  { %660 = vrot.lane.b32.xlu0 %v1024_v30, %s1026_s28 }
 0x1d4   :  { %741 = vrot.lane.b32.xlu0 %v626_v59, %s1027_s3 }
 0x1fd   :  { %v653_v31 = vpop.permute.xlu2 %652 }
 0x1fe   :  { %v674_v32 = vmul.f32 %v653_v31, %v1258_v25 }
 0x200   :  { %v682_v35 = vpack.c.bf16 %v674_v32, %v674_v32 }
 0x202   :  { %700 = vrot.lane.b32.xlu1 %v682_v35, %s1028_s18 }
 0x206   :  { %v659_v36 = vpop.permute.xlu2 %658 }
 0x207   :  { %v677_v37 = vmul.f32 %v659_v36, %v1273_v41 }
 0x209   :  { %v685_v38 = vpack.c.bf16 %v677_v37, %v677_v37 }
 0x20b   :  { %706 = vrot.lane.b32.xlu1 %v685_v38, %s1028_s18 }
 0x20e   :  { %v740_v39 = vpop.permute.xlu2 %739 }
 0x20f   :  { %763 = vst.msk [vmem:[%s1486_s5 + $0x8] sm:$0xff] %vm761_vm1, %v740_v39 }
 0x213   :  { %749 = vrot.lane.b32.xlu1 %v630_v29, %s1027_s3 }
 0x216   :  { %v746_v25 = vpop.permute.xlu2 %745 }
 0x217   :  { %766 = vst.msk [vmem:[%s1486_s5 + $0x20] sm:$0xff] %vm761_vm1, %v746_v25 }
 0x21d   :  { %v651_v40 = vpop.permute.xlu1 %650 }
 0x21e   :  { %v673_v41 = vmul.f32 %v651_v40, %v1331_v21 }
 0x220   :  { %v681_v42 = vpack.c.bf16 %v673_v41, %v673_v41 }
 0x222   :  { %698 = vrot.lane.b32.xlu0 %v681_v42, %s1028_s18 }
 0x225   :  { %v657_v43 = vpop.permute.xlu1 %656 }
 0x226   :  { %v676_v44 = vmul.f32 %v657_v43, %v1351_v33 }
 0x228   :  { %v684_v45 = vpack.c.bf16 %v676_v44, %v676_v44 }
 0x22a   :  { %704 = vrot.lane.b32.xlu0 %v684_v45, %s1028_s18 }
 0x22d   :  { %v663_v46 = vpop.permute.xlu1 %662 }
 0x22e   :  { %v679_v18 = vmul.f32 %v663_v46, %v1366_v49  ;;  %v649_v48 = vpop.permute.xlu0 %648 }
 0x22f   :  { %v672_v50 = vmul.f32 %v649_v48, %v1298_v62 }
 0x230   :  { %v687_v51 = vpack.c.bf16 %v679_v18, %v679_v18 }
 0x231   :  { %v680_v52 = vpack.c.bf16 %v672_v50, %v672_v50 }
 0x232   :  { %710 = vrot.lane.b32.xlu0 %v687_v51, %s1028_s18 }
 0x233   :  { %696 = vrot.lane.b32.xlu2 %v680_v52, %s1028_s18 }
 0x235   :  { %v738_v21 = vpop.permute.xlu1 %737 }
 0x236   :  { %762 = vst.msk [vmem:[%s1486_s5] sm:$0xff] %vm761_vm1, %v738_v21  ;;  %v655_v33 = vpop.permute.xlu0 %654 }
 0x237   :  { %v675_v53 = vmul.f32 %v655_v33, %v1328_v20 }
 0x239   :  { %v683_v47 = vpack.c.bf16 %v675_v53, %v675_v53 }
 0x23a   :  { %747 = vrot.lane.b32.xlu0 %v1373_v5, %s1027_s3 }
 0x23b   :  { %702 = vrot.lane.b32.xlu2 %v683_v47, %s1028_s18 }
 0x23d   :  { %v744_v62 = vpop.permute.xlu1 %743 }
 0x23e   :  { %765 = vst.msk [vmem:[%s1486_s5 + $0x18] sm:$0xff] %vm761_vm1, %v744_v62  ;;  %v661_v49 = vpop.permute.xlu0 %660 }
 0x23f   :  { %v678_v54 = vmul.f32 %v661_v49, %v1353_v34 }
 0x241   :  { %v686_v55 = vpack.c.bf16 %v678_v54, %v678_v54 }
 0x243   :  { %708 = vrot.lane.b32.xlu2 %v686_v55, %s1028_s18 }
 0x246   :  { %v742_v56 = vpop.permute.xlu0 %741 }
 0x247   :  { %764 = vst.msk [vmem:[%s1486_s5 + $0x10] sm:$0xff] %vm761_vm1, %v742_v56 }
 0x24b   :  { %751 = vrot.lane.b32.xlu2 %v1382_v16, %s1027_s3 }
 0x274   :  { %v701_v20 = vpop.permute.xlu1 %700 }
 0x275   :  { %723 = vst.msk [vmem:[%s1487_s4 + $0x8] sm:$0xf] %vm720_vm2, %v701_v20 }
 0x27d   :  { %v707_v34 = vpop.permute.xlu1 %706 }
 0x27e   :  { %726 = vst.msk [vmem:[%s1487_s4 + $0x14] sm:$0xf] %vm720_vm2, %v707_v34 }
 0x285   :  { %v750_v57 = vpop.permute.xlu1 %749 }
 0x286   :  { %768 = vst.msk [vmem:[%s1486_s5 + $0x30] sm:$0xff] %vm761_vm1, %v750_v57 }
 0x28d   :  { %v697_v58 = vpop.permute.xlu2 %696 }
 0x28e   :  { %721 = vst.msk [vmem:[%s1487_s4] sm:$0xf] %vm720_vm2, %v697_v58 }
 0x294   :  { %v699_v59 = vpop.permute.xlu0 %698 }
 0x295   :  { %v703_v60 = vpop.permute.xlu2 %702  ;;  %722 = vst.msk [vmem:[%s1487_s4 + $0x4] sm:$0xf] %vm720_vm2, %v699_v59 }
 0x296   :  { %724 = vst.msk [vmem:[%s1487_s4 + $0xc] sm:$0xf] %vm720_vm2, %v703_v60 }
 0x29c   :  { %v705_v61 = vpop.permute.xlu0 %704 }
 0x29d   :  { %v709_v63 = vpop.permute.xlu2 %708  ;;  %725 = vst.msk [vmem:[%s1487_s4 + $0x10] sm:$0xf] %vm720_vm2, %v705_v61 }
 0x29e   :  { %727 = vst.msk [vmem:[%s1487_s4 + $0x18] sm:$0xf] %vm720_vm2, %v709_v63 }
 0x2a4   :  { %v711_v0 = vpop.permute.xlu0 %710 }
 0x2a5   :  { %v752_v2 = vpop.permute.xlu2 %751  ;;  %728 = vst.msk [vmem:[%s1487_s4 + $0x1c] sm:$0xf] %vm720_vm2, %v711_v0 }
 0x2a6   :  { %769 = vst.msk [vmem:[%s1486_s5 + $0x38] sm:$0xff] %vm761_vm1, %v752_v2 }
 0x2ac   :  { %v748_v3 = vpop.permute.xlu0 %747 }
 0x2ad   :  { %767 = vst.msk [vmem:[%s1486_s5 + $0x28] sm:$0xff] %vm761_vm1, %v748_v3 }

// kernel: recurrent_ref_encoder_forward.8
= control target key start
LH: loop header
LB: loop body
LE: loop exit
PB: predicated region body
PF: predicated region fallthrough
CT: control target
= control target key end

     0   :  { %vm242_vm0 = vcmask 130048   ;;  %vm306_vm1 = vcmask 257024   ;;  %s588_s1 = inlined_call_operand.vmem [shape: bf16[400,32], index: 1, kind: input, shape index: {}]   ;;  %s589_s0 = inlined_call_operand.vmem [shape: bf16[16,400], index: 0, kind: input, shape index: {}]   ;;  %s590_s2 = inlined_call_operand.vmem [shape: f32[1,32], index: 2, kind: input, shape index: {}]   ;;  %s591_s3 = inlined_call_operand.vmem [shape: bf16[16,32], index: 3, kind: output, shape index: {}]  }
   0x1   :  { %v441_v0 = vld [vmem:[%s588_s1 + $0x38] sm:$0xff]  ;;  %v440_v3 = vld [vmem:[%s588_s1 + $0x30] sm:$0xff]  ;;  %v439_v6 = vld [vmem:[%s588_s1 + $0x28] sm:$0xff] }
   0x2   :  { %v449_v1 = vld [vmem:[%s588_s1 + $0x78] sm:$0xff]  ;;  %246 = vmatpush.bf16.msra.mxu0 %v441_v0  ;;  %v448_v4 = vld [vmem:[%s588_s1 + $0x70] sm:$0xff]  ;;  %v447_v7 = vld [vmem:[%s588_s1 + $0x68] sm:$0xff] }
   0x3   :  { %v457_v2 = vld [vmem:[%s588_s1 + $0xb8] sm:$0xff]  ;;  %260 = vmatpush.bf16.msra.mxu1 %v449_v1  ;;  %v456_v5 = vld [vmem:[%s588_s1 + $0xb0] sm:$0xff]  ;;  %v458_v8 = vld [vmem:[%s588_s1 + $0xc0] sm:$0xff] }
   0x4   :  { %274 = vmatpush.bf16.msra.mxu2 %v457_v2  ;;  %v455_v9 = vld [vmem:[%s588_s1 + $0xa8] sm:$0xff]  ;;  %v325_v11 = vld [vmem:[%s589_s0 + $0x18] sm:$0xf0]  ;;  %295 = vmatpush.bf16.msra.mxu3 %v458_v8  ;;  %v438_v13 = vld [vmem:[%s588_s1 + $0x20] sm:$0xff] }
   0x5   :  { %v431_v10 = vld [vmem:[%s589_s0 + $0xc] sm:$0xf]  ;;  %v446_v14 = vld [vmem:[%s588_s1 + $0x60] sm:$0xff]  ;;  %v437_v16 = vld [vmem:[%s588_s1 + $0x18] sm:$0xff] }
   0x6   :  { %247 = vmatpush.bf16.msra.mxu0 %v440_v3  ;;  %v328_v12 = vor.u32 %v431_v10, %v325_v11  ;;  %v454_v15 = vld [vmem:[%s588_s1 + $0xa0] sm:$0xff]  ;;  %v445_v17 = vld [vmem:[%s588_s1 + $0x58] sm:$0xff]  ;;  %v436_v19 = vld [vmem:[%s588_s1 + $0x10] sm:$0xff] }
   0x7   :  { %261 = vmatpush.bf16.msra.mxu1 %v448_v4  ;;  %v453_v18 = vld [vmem:[%s588_s1 + $0x98] sm:$0xff]  ;;  %v444_v20 = vld [vmem:[%s588_s1 + $0x50] sm:$0xff]  ;;  %v435_v22 = vld [vmem:[%s588_s1 + $0x8] sm:$0xff] }
   0x8   :  { %275 = vmatpush.bf16.msra.mxu2 %v456_v5  ;;  %429 = vmatmul.msk.bf16.vlgmr.msra.gmra.mxu3 %vm242_vm0, %v328_v12  ;;  %v452_v21 = vld [vmem:[%s588_s1 + $0x90] sm:$0xff]  ;;  %v443_v23 = vld [vmem:[%s588_s1 + $0x48] sm:$0xff]  ;;  %v434_v25 = vld [vmem:[%s588_s1] sm:$0xff] }
   0x9   :  { %v451_v24 = vld [vmem:[%s588_s1 + $0x88] sm:$0xff]  ;;  %v442_v26 = vld [vmem:[%s588_s1 + $0x40] sm:$0xff]  ;;  %v432_v28 = vld [vmem:[%s589_s0 + $0xc] sm:$0xf0] }
   0xa   :  { %248 = vmatpush.bf16.msra.mxu0 %v439_v6  ;;  %v315_v27 = vld [vmem:[%s589_s0] sm:$0xf]  ;;  %v430_v29 = vld [vmem:[%s589_s0 + $0x4] sm:$0xf]  ;;  %v317_v30 = vld [vmem:[%s589_s0 + $0x10] sm:$0xf0] }
   0xb   :  { %262 = vmatpush.bf16.msra.mxu1 %v447_v7  ;;  %v450_v31 = vld [vmem:[%s588_s1 + $0x80] sm:$0xff]  ;;  %v323_v32 = vld [vmem:[%s589_s0 + $0x8] sm:$0xf]  ;;  %v433_v33 = vld [vmem:[%s589_s0 + $0x14] sm:$0xf0]  ;;  %v316_v34 = vor.u32 %v432_v28, %v315_v27  ;;  %v320_v35 = vor.u32 %v430_v29, %v317_v30 }
   0xc   :  { %276 = vmatpush.bf16.msra.mxu2 %v455_v9  ;;  %v324_v36 = vor.u32 %v433_v33, %v323_v32  ;;  %v459_v37 = vld [vmem:[%s590_s2] ss:$0 sm:$0xff] }
   0xe   :  { %249 = vmatpush.bf16.msra.mxu0 %v438_v13 }
   0xf   :  { %263 = vmatpush.bf16.msra.mxu1 %v446_v14 }
  0x10   :  { %277 = vmatpush.bf16.msra.mxu2 %v454_v15 }
  0x12   :  { %250 = vmatpush.bf16.msra.mxu0 %v437_v16 }
  0x13   :  { %264 = vmatpush.bf16.msra.mxu1 %v445_v17 }
  0x14   :  { %278 = vmatpush.bf16.msra.mxu2 %v453_v18 }
  0x16   :  { %251 = vmatpush.bf16.msra.mxu0 %v436_v19 }
  0x17   :  { %265 = vmatpush.bf16.msra.mxu1 %v444_v20 }
  0x18   :  { %279 = vmatpush.bf16.msra.mxu2 %v452_v21 }
  0x1a   :  { %252 = vmatpush.bf16.msra.mxu0 %v435_v22 }
  0x1b   :  { %266 = vmatpush.bf16.msra.mxu1 %v443_v23 }
  0x1c   :  { %280 = vmatpush.bf16.msra.mxu2 %v451_v24 }
  0x1e   :  { %253 = vmatpush.bf16.msra.mxu0 %v434_v25 }
  0x1f   :  { %267 = vmatpush.bf16.msra.mxu1 %v442_v26 }
  0x20   :  { %281 = vmatpush.bf16.msra.mxu2 %v450_v31 }
  0x21   :  { %254 = vmatmul.bf16.vlgmr.msra.gmra.mxu0 %v316_v34 }
  0x22   :  { %268 = vmatmul.bf16.vlgmr.msra.gmra.mxu1 %v320_v35 }
  0x23   :  { %282 = vmatmul.bf16.vlgmr.msra.gmra.mxu2 %v324_v36 }
  0x8b   :  { %v297_v42 = vpop.f32.mrf.mxu3 }
  0x93   :  { %v299_v54 = vpop.f32.mrf.mxu3 }
  0x9e   :  { %v255_v38 = vpop.f32.mrf.mxu0 }
  0x9f   :  { %v256_v39 = vadd.f32 %v459_v37, %v255_v38  ;;  %v269_v40 = vpop.f32.mrf.mxu1 }
  0xa1   :  { %v270_v41 = vadd.f32 %v269_v40, %v256_v39 }
  0xa6   :  { %v283_v43 = vpop.f32.mrf.mxu2  ;;  %v257_v45 = vpop.f32.mrf.mxu0 }
  0xa7   :  { %v284_v44 = vadd.f32 %v283_v43, %v270_v41  ;;  %v258_v47 = vadd.f32 %v459_v37, %v257_v45  ;;  %v271_v49 = vpop.f32.mrf.mxu1 }
  0xa9   :  { %v298_v46 = vadd.f32 %v297_v42, %v284_v44  ;;  %v272_v51 = vadd.f32 %v271_v49, %v258_v47 }
  0xab   :  { %v302_v48 = vmax.f32 %v298_v46, 0.0 }
  0xad   :  { %v304_v50 = vpack.c.bf16 %v302_v48, %v302_v48 }
  0xae   :  { %v285_v52 = vpop.f32.mrf.mxu2 }
  0xaf   :  { %307 = vst.msk [vmem:[%s591_s3] sm:$0xf] %vm306_vm1, %v304_v50  ;;  %v286_v53 = vadd.f32 %v285_v52, %v272_v51 }
  0xb1   :  { %v300_v55 = vadd.f32 %v299_v54, %v286_v53 }
  0xb3   :  { %v303_v56 = vmax.f32 %v300_v55, 0.0 }
  0xb5   :  { %v305_v57 = vpack.c.bf16 %v303_v56, %v303_v56 }
  0xb7   :  { %308 = vst.msk [vmem:[%s591_s3 + $0x4] sm:$0xf] %vm306_vm1, %v305_v57 }

// kernel: recurrent_ref_encoder_forward.9
= control target key start
LH: loop header
LB: loop body
LE: loop exit
PB: predicated region body
PF: predicated region fallthrough
CT: control target
= control target key end

     0   :  { %s761_s18 = smov 32   ;;  %vm343_vm0 = vcmask 523264   ;;  %vm522_vm9 = vcmask 261120   ;;  %vm511_vm10 = vcmask 257024   ;;  %s961_s1 = inlined_call_operand.vmem [shape: bf16[576,128], index: 1, kind: input, shape index: {}]   ;;  %s962_s3 = inlined_call_operand.vmem [shape: f32[16,32], index: 3, kind: input, shape index: {}, may-alias: {3,5}]   ;;  %s963_s2 = inlined_call_operand.vmem [shape: f32[1,128], index: 2, kind: input, shape index: {}]   ;;  %s964_s0 = inlined_call_operand.vmem [shape: bf16[16,576], index: 0, kind: input, shape index: {}]   ;;  %s965_s5 = inlined_call_operand.vmem [shape: f32[16,32], index: 5, kind: output, shape index: {1}, may-alias: {3,5}]   ;;  %s966_s4 = inlined_call_operand.vmem [shape: bf16[16,32], index: 4, kind: output, shape index: {0}]  }
   0x1   :  { %v712_v0 = vld [vmem:[%s961_s1 + $0x38] sm:$0xff]  ;;  %v711_v4 = vld [vmem:[%s961_s1 + $0x30] sm:$0xff]  ;;  %v710_v8 = vld [vmem:[%s961_s1 + $0x28] sm:$0xff] }
   0x2   :  { %v728_v1 = vld [vmem:[%s961_s1 + $0xb8] sm:$0xff]  ;;  %347 = vmatpush.bf16.msra.mxu0 %v712_v0  ;;  %v727_v5 = vld [vmem:[%s961_s1 + $0xb0] sm:$0xff]  ;;  %v726_v9 = vld [vmem:[%s961_s1 + $0xa8] sm:$0xff] }
   0x3   :  { %v736_v2 = vld [vmem:[%s961_s1 + $0xf8] sm:$0xff]  ;;  %375 = vmatpush.bf16.msra.mxu2 %v728_v1  ;;  %v735_v6 = vld [vmem:[%s961_s1 + $0xf0] sm:$0xff]  ;;  %v734_v10 = vld [vmem:[%s961_s1 + $0xe8] sm:$0xff] }
   0x4   :  { %v720_v3 = vld [vmem:[%s961_s1 + $0x78] sm:$0xff]  ;;  %389 = vmatpush.bf16.msra.mxu3 %v736_v2  ;;  %v719_v7 = vld [vmem:[%s961_s1 + $0x70] sm:$0xff]  ;;  %v718_v11 = vld [vmem:[%s961_s1 + $0x68] sm:$0xff] }
   0x5   :  { %361 = vmatpush.bf16.msra.mxu1 %v720_v3  ;;  %v709_v12 = vld [vmem:[%s961_s1 + $0x20] sm:$0xff]  ;;  %v708_v16 = vld [vmem:[%s961_s1 + $0x18] sm:$0xff]  ;;  %v707_v21 = vld [vmem:[%s961_s1 + $0x10] sm:$0xff] }
   0x6   :  { %348 = vmatpush.bf16.msra.mxu0 %v711_v4  ;;  %v725_v13 = vld [vmem:[%s961_s1 + $0xa0] sm:$0xff]  ;;  %v724_v17 = vld [vmem:[%s961_s1 + $0x98] sm:$0xff]  ;;  %v723_v22 = vld [vmem:[%s961_s1 + $0x90] sm:$0xff] }
   0x7   :  { %376 = vmatpush.bf16.msra.mxu2 %v727_v5  ;;  %v733_v14 = vld [vmem:[%s961_s1 + $0xe0] sm:$0xff]  ;;  %v732_v18 = vld [vmem:[%s961_s1 + $0xd8] sm:$0xff]  ;;  %v731_v23 = vld [vmem:[%s961_s1 + $0xd0] sm:$0xff] }
   0x8   :  { %390 = vmatpush.bf16.msra.mxu3 %v735_v6  ;;  %v717_v15 = vld [vmem:[%s961_s1 + $0x60] sm:$0xff]  ;;  %v716_v19 = vld [vmem:[%s961_s1 + $0x58] sm:$0xff]  ;;  %v715_v24 = vld [vmem:[%s961_s1 + $0x50] sm:$0xff] }
   0x9   :  { %362 = vmatpush.bf16.msra.mxu1 %v719_v7  ;;  %v457_v20 = vld [vmem:[%s962_s3] sm:$0xff]  ;;  %v706_v25 = vld [vmem:[%s961_s1 + $0x8] sm:$0xff]  ;;  %v702_v34 = vld [vmem:[%s964_s0 + $0x10] sm:$0xf0] }
   0xa   :  { %349 = vmatpush.bf16.msra.mxu0 %v710_v8  ;;  %461 = vrot.lane.b32.xlu1 %v457_v20, %s761_s18  ;;  %v722_v26 = vld [vmem:[%s961_s1 + $0x88] sm:$0xff]  ;;  %v705_v29 = vld [vmem:[%s961_s1] sm:$0xff]  ;;  %v703_v37 = vld [vmem:[%s964_s0 + $0x18] sm:$0xf0] }
   0xb   :  { %377 = vmatpush.bf16.msra.mxu2 %v726_v9  ;;  %v730_v27 = vld [vmem:[%s961_s1 + $0xc8] sm:$0xff]  ;;  %v721_v30 = vld [vmem:[%s961_s1 + $0x80] sm:$0xff]  ;;  %v537_v41 = vld [vmem:[%s964_s0 + $0x14] sm:$0xf0] }
   0xc   :  { %391 = vmatpush.bf16.msra.mxu3 %v734_v10  ;;  %v714_v28 = vld [vmem:[%s961_s1 + $0x48] sm:$0xff]  ;;  %v729_v31 = vld [vmem:[%s961_s1 + $0xc0] sm:$0xff]  ;;  %v740_v42 = vld [vmem:[%s961_s1 + $0x118] sm:$0xff] }
   0xd   :  { %363 = vmatpush.bf16.msra.mxu1 %v718_v11  ;;  %v713_v32 = vld [vmem:[%s961_s1 + $0x40] sm:$0xff]  ;;  %v458_v35 = vld [vmem:[%s962_s3 + $0x8] sm:$0xff]  ;;  %v739_v47 = vld [vmem:[%s961_s1 + $0x110] sm:$0xff] }
   0xe   :  { %350 = vmatpush.bf16.msra.mxu0 %v709_v12  ;;  %v535_v33 = vld [vmem:[%s964_s0] sm:$0xf]  ;;  %v543_v36 = vld [vmem:[%s964_s0 + $0x8] sm:$0xf]  ;;  %v701_v38 = vld [vmem:[%s964_s0 + $0xc] sm:$0xf] }
   0xf   :  { %378 = vmatpush.bf16.msra.mxu2 %v725_v13  ;;  %v545_v39 = vld [vmem:[%s964_s0 + $0x1c] sm:$0xf0]  ;;  %v700_v40 = vld [vmem:[%s964_s0 + $0x4] sm:$0xf]  ;;  %v536_v43 = vor.u32 %v702_v34, %v535_v33  ;;  %v544_v44 = vor.u32 %v703_v37, %v543_v36  ;;  %v738_v48 = vld [vmem:[%s961_s1 + $0x108] sm:$0xff] }
  0x10   :  { %392 = vmatpush.bf16.msra.mxu3 %v733_v14  ;;  %v548_v45 = vor.u32 %v701_v38, %v545_v39  ;;  %v540_v46 = vor.u32 %v700_v40, %v537_v41  ;;  %v737_v49 = vld [vmem:[%s961_s1 + $0x100] sm:$0xff]  ;;  %v551_v50 = vld [vmem:[%s964_s0 + $0x10] sm:$0xf]  ;;  %s763_s1 = smov 64  }
  0x11   :  { %364 = vmatpush.bf16.msra.mxu1 %v717_v15  ;;  %v704_v51 = vld [vmem:[%s964_s0 + $0x20] sm:$0xf0]  ;;  %v744_v54 = vld [vmem:[%s963_s2] ss:$0 sm:$0xff]  ;;  %s762_s0 = smov 96  }
  0x12   :  { %351 = vmatpush.bf16.msra.mxu0 %v708_v16  ;;  %463 = vrot.lane.b32.xlu1 %v458_v35, %s761_s18  ;;  %v552_v52 = vor.u32 %v704_v51, %v551_v50 }
  0x13   :  { %379 = vmatpush.bf16.msra.mxu2 %v724_v17 }
  0x14   :  { %393 = vmatpush.bf16.msra.mxu3 %v732_v18 }
  0x15   :  { %365 = vmatpush.bf16.msra.mxu1 %v716_v19 }
  0x16   :  { %352 = vmatpush.bf16.msra.mxu0 %v707_v21 }
  0x17   :  { %380 = vmatpush.bf16.msra.mxu2 %v723_v22 }
  0x18   :  { %394 = vmatpush.bf16.msra.mxu3 %v731_v23 }
  0x19   :  { %366 = vmatpush.bf16.msra.mxu1 %v715_v24 }
  0x1a   :  { %353 = vmatpush.bf16.msra.mxu0 %v706_v25 }
  0x1b   :  { %381 = vmatpush.bf16.msra.mxu2 %v722_v26 }
  0x1c   :  { %395 = vmatpush.bf16.msra.mxu3 %v730_v27 }
  0x1d   :  { %367 = vmatpush.bf16.msra.mxu1 %v714_v28 }
  0x1e   :  { %354 = vmatpush.bf16.msra.mxu0 %v705_v29 }
  0x1f   :  { %382 = vmatpush.bf16.msra.mxu2 %v721_v30 }
  0x20   :  { %396 = vmatpush.bf16.msra.mxu3 %v729_v31 }
  0x21   :  { %368 = vmatpush.bf16.msra.mxu1 %v713_v32  ;;  %355 = vmatmul.bf16.vlgmr.msra.gmra.mxu0 %v536_v43 }
  0x22   :  { %407 = vmatpush.bf16.msrb.mxu0 %v740_v42  ;;  %383 = vmatmul.bf16.vlgmr.msra.gmra.mxu2 %v544_v44 }
  0x23   :  { %397 = vmatmul.bf16.vlgmr.msra.gmra.mxu3 %v548_v45 }
  0x24   :  { %369 = vmatmul.bf16.vlgmr.msra.gmra.mxu1 %v540_v46 }
  0x26   :  { %408 = vmatpush.bf16.msrb.mxu0 %v739_v47 }
  0x2a   :  { %409 = vmatpush.bf16.msrb.mxu0 %v738_v48 }
  0x2e   :  { %410 = vmatpush.bf16.msrb.mxu0 %v737_v49 }
  0x31   :  { %697 = vmatmul.msk.bf16.vlgmr.msrb.gmra.mxu0 %vm343_vm0, %v552_v52 }
  0x7c   :  { %v462_v42 = vpop.permute.xlu1 %461 }
  0x84   :  { %v464_v46 = vpop.permute.xlu1 %463 }
  0x9e   :  { %v356_v53 = vpop.f32.mrf.mxu0 }
  0x9f   :  { %v357_v56 = vadd.f32 %v744_v54, %v356_v53 }
  0xa1   :  { %v370_v55 = vpop.f32.mrf.mxu1 }
  0xa2   :  { %v371_v59 = vadd.f32 %v370_v55, %v357_v56 }
  0xa5   :  { %v384_v57 = vpop.f32.mrf.mxu2 }
  0xa6   :  { %v358_v58 = vpop.f32.mrf.mxu0  ;;  %v385_v60 = vadd.f32 %v384_v57, %v371_v59  ;;  %v398_v61 = vpop.f32.mrf.mxu3 }
  0xa7   :  { %v359_v62 = vadd.f32 %v744_v54, %v358_v58 }
  0xa8   :  { %v399_v0 = vadd.f32 %v398_v61, %v385_v60 }
  0xa9   :  { %v372_v63 = vpop.f32.mrf.mxu1 }
  0xaa   :  { %v373_v3 = vadd.f32 %v372_v63, %v359_v62 }
  0xad   :  { %v386_v1 = vpop.f32.mrf.mxu2 }
  0xae   :  { %v412_v2 = vpop.f32.mrf.mxu0  ;;  %v387_v5 = vadd.f32 %v386_v1, %v373_v3  ;;  %v400_v6 = vpop.f32.mrf.mxu3 }
  0xaf   :  { %v413_v4 = vadd.f32 %v412_v2, %v399_v0 }
  0xb0   :  { %v401_v7 = vadd.f32 %v400_v6, %v387_v5 }
  0xb1   :  { %745 = vtanh.f32 %v413_v4  ;;  %v698_v12 = vmul.f32 -1.442695, %v413_v4 }
  0xb6   :  { %v414_v8 = vpop.f32.mrf.mxu0 }
  0xb7   :  { %v746_v9 = vpop.eup %745  ;;  %v415_v10 = vadd.f32 %v414_v8, %v401_v7 }
  0xb8   :  { %471 = vrot.lane.b32.xlu0 %v746_v9, %s761_s18 }
  0xb9   :  { %747 = vtanh.f32 %v415_v10  ;;  %v699_v13 = vmul.f32 -1.442695, %v415_v10 }
  0xba   :  { %749 = vpow2.f32 %v698_v12 }
  0xbb   :  { %751 = vpow2.f32 %v699_v13 }
  0xbf   :  { %v748_v11 = vpop.eup %747 }
  0xc0   :  { %473 = vrot.lane.b32.xlu0 %v748_v11, %s761_s18  ;;  %v750_v14 = vpop.eup %749 }
  0xc1   :  { %v423_v15 = vadd.f32 1.0, %v750_v14  ;;  %v752_v16 = vpop.eup %751 }
  0xc2   :  { %v424_v17 = vadd.f32 1.0, %v752_v16 }
  0xc3   :  { %753 = vrcp.f32 %v423_v15  ;;  %v436_v26 = vand.u32 2147483648, %v423_v15  ;;  %vm430_vm2 = vweird.f32 %v423_v15  ;;  %v434_v27 = vand.u32 2147483647, %v423_v15 }
  0xc4   :  { %755 = vrcp.f32 %v424_v17  ;;  %v451_v35 = vand.u32 2147483648, %v424_v17  ;;  %vm445_vm6 = vweird.f32 %v424_v17  ;;  %v449_v36 = vand.u32 2147483647, %v424_v17 }
  0xc5   :  { %v437_v30 = vor.u32 1.1754944e-38, %v436_v26  ;;  %vm435_vm4 = vcmp.eq.f32.partialorder %v434_v27, 8.507059e+37 }
  0xc6   :  { %v452_v38 = vor.u32 1.1754944e-38, %v451_v35  ;;  %vm450_vm8 = vcmp.eq.f32.partialorder %v449_v36, 8.507059e+37 }
  0xc9   :  { %v754_v18 = vpop.eup %753 }
  0xca   :  { %v426_v19 = vmul.f32 %v754_v18, %v423_v15  ;;  %v756_v21 = vpop.eup %755  ;;  %vm431_vm1 = vweird.f32 %v754_v18 }
  0xcb   :  { %v441_v23 = vmul.f32 %v756_v21, %v424_v17  ;;  %vm432_vm3 = vmor %vm430_vm2, %vm431_vm1  ;;  %vm446_vm5 = vweird.f32 %v756_v21 }
  0xcc   :  { %v427_v20 = vsub.f32 1.0, %v426_v19  ;;  %vm447_vm7 = vmor %vm445_vm6, %vm446_vm5 }
  0xcd   :  { %v442_v25 = vsub.f32 1.0, %v441_v23 }
  0xce   :  { %v428_v22 = vmul.f32 %v754_v18, %v427_v20 }
  0xcf   :  { %v443_v29 = vmul.f32 %v756_v21, %v442_v25 }
  0xd0   :  { %v429_v24 = vadd.f32 %v754_v18, %v428_v22 }
  0xd1   :  { %v444_v33 = vadd.f32 %v756_v21, %v443_v29 }
  0xd2   :  { %v433_v28 = vsel %vm432_vm3, %v754_v18, %v429_v24 }
  0xd3   :  { %v438_v31 = vsel %vm435_vm4, %v437_v30, %v433_v28  ;;  %v448_v37 = vsel %vm447_vm7, %v756_v21, %v444_v33 }
  0xd4   :  { %v453_v39 = vsel %vm450_vm8, %v452_v38, %v448_v37  ;;  %v467_v43 = vmul.f32 %v462_v42, %v438_v31 }
  0xd5   :  { %v468_v47 = vmul.f32 %v464_v46, %v453_v39 }
 0x12a   :  { %v472_v32 = vpop.permute.xlu0 %471 }
 0x12b   :  { %v477_v34 = vmul.f32 %v472_v32, %v438_v31 }
 0x12d   :  { %481 = vrot.lane.b32.xlu2 %v477_v34, %s761_s18 }
 0x132   :  { %v474_v40 = vpop.permute.xlu0 %473 }
 0x133   :  { %v478_v41 = vmul.f32 %v474_v40, %v453_v39 }
 0x135   :  { %483 = vrot.lane.b32.xlu2 %v478_v41, %s761_s18 }
 0x187   :  { %v482_v44 = vpop.permute.xlu2 %481 }
 0x188   :  { %v487_v45 = vadd.f32 %v482_v44, %v467_v43 }
 0x18a   :  { %757 = vtanh.f32 %v487_v45 }
 0x18f   :  { %v484_v48 = vpop.permute.xlu2 %483 }
 0x190   :  { %v758_v49 = vpop.eup %757  ;;  %v488_v50 = vadd.f32 %v484_v48, %v468_v47 }
 0x191   :  { %493 = vrot.lane.b32.xlu0 %v758_v49, %s761_s18 }
 0x192   :  { %759 = vtanh.f32 %v488_v50 }
 0x198   :  { %v760_v51 = vpop.eup %759 }
 0x199   :  { %495 = vrot.lane.b32.xlu1 %v760_v51, %s761_s18 }
 0x1a1   :  { %516 = vrot.lane.b32.xlu1 %v487_v45, %s762_s0 }
 0x203   :  { %v494_v52 = vpop.permute.xlu0 %493 }
 0x204   :  { %v499_v53 = vmul.f32 %v494_v52, %v438_v31 }
 0x206   :  { %v501_v54 = vpack.c.bf16 %v499_v53, %v499_v53 }
 0x208   :  { %505 = vrot.lane.b32.xlu2 %v501_v54, %s763_s1 }
 0x20b   :  { %v496_v55 = vpop.permute.xlu1 %495 }
 0x20c   :  { %v500_v56 = vmul.f32 %v496_v55, %v453_v39 }
 0x20e   :  { %v502_v57 = vpack.c.bf16 %v500_v56, %v500_v56 }
 0x210   :  { %507 = vrot.lane.b32.xlu0 %v502_v57, %s763_s1  ;;  %518 = vrot.lane.b32.xlu2 %v488_v50, %s762_s0 }
 0x213   :  { %v517_v58 = vpop.permute.xlu1 %516 }
 0x214   :  { %523 = vst.msk [vmem:[%s965_s5] sm:$0xff] %vm522_vm9, %v517_v58 }
 0x262   :  { %v506_v59 = vpop.permute.xlu2 %505 }
 0x263   :  { %512 = vst.msk [vmem:[%s966_s4] sm:$0xf] %vm511_vm10, %v506_v59 }
 0x26a   :  { %v519_v60 = vpop.permute.xlu2 %518 }
 0x26b   :  { %524 = vst.msk [vmem:[%s965_s5 + $0x8] sm:$0xff] %vm522_vm9, %v519_v60 }
 0x282   :  { %v508_v61 = vpop.permute.xlu0 %507 }
 0x283   :  { %513 = vst.msk [vmem:[%s966_s4 + $0x4] sm:$0xf] %vm511_vm10, %v508_v61 }

</bundles_post_ra>
